<compile_context>
chip_gen: v7x
topology: tpu7x:2x2x1
jax: 0.10.0
libtpu: 0.0.40
codegen_flags: <defaults>
</compile_context>

<pallas_src>
import jax
import jax.numpy as jnp
from jax.experimental import pallas as pl
from jax.experimental.pallas import tpu as pltpu


# ---------------------------------------------------------------------------
# Kernels
# ---------------------------------------------------------------------------

def _img_head_kernel(x_ref, w1t_ref, b1_ref, w2t_ref, b2_ref, out_ref, sig_ref):
    """DAImgHead on a (C, pixel-tile) slab: 1x1 conv -> ReLU -> 1x1 conv (+ sigmoid).

    x_ref:   (1, C, tp)  f32  pixel tile (channels on sublanes, pixels on lanes)
    w1t_ref: (hid, C)    bf16 first 1x1 conv, pre-transposed
    b1_ref:  (hid, 1)    f32  column bias
    w2t_ref: (1, hid)    bf16 second 1x1 conv, pre-transposed
    b2_ref:  (1,)        f32  scalar bias in SMEM
    """
    x = x_ref[0].astype(jnp.bfloat16)                                    # (C, tp)
    h = jnp.dot(w1t_ref[...], x, preferred_element_type=jnp.float32)     # (hid, tp)
    h = jnp.maximum(h + b1_ref[...], 0.0)                                # ReLU
    # (1, hid) @ (hid, tp): thin vector-matmul, output stays lane-dense.
    o = jnp.dot(w2t_ref[...], h.astype(jnp.bfloat16),
                preferred_element_type=jnp.float32) + b2_ref[0]          # (1, tp)
    out_ref[0] = o                                                       # logits
    sig_ref[0] = jax.nn.sigmoid(o)                                       # consist


def _ins_head_kernel(x_ref, w1_ref, b1_ref, w2_ref, b2_ref, w3_ref, b3_ref,
                     out_ref, sig_ref):
    """AvgPool2d(7,7) + DAInsHead (3 FC layers, ReLU between, eval-mode dropout).

    x_ref: (tn, C, 49) f32; weights bf16; b1/b2 (1, hid) f32; b3 (1,) f32 in SMEM.
    """
    # Mean over the 7x7 window == AvgPool2d(7,7) on a 7x7 input, then flatten.
    pooled = jnp.mean(x_ref[...], axis=-1)                               # (tn, C)
    h = jnp.dot(pooled.astype(jnp.bfloat16), w1_ref[...],
                preferred_element_type=jnp.float32)
    h = jnp.maximum(h + b1_ref[...], 0.0)
    h = jnp.dot(h.astype(jnp.bfloat16), w2_ref[...],
                preferred_element_type=jnp.float32)
    h = jnp.maximum(h + b2_ref[...], 0.0)
    o = jnp.dot(h.astype(jnp.bfloat16), w3_ref[...],
                preferred_element_type=jnp.float32) + b3_ref[0]          # (tn, 1)
    out_ref[...] = o                                                     # logits
    sig_ref[...] = jax.nn.sigmoid(o)                                     # consist


# ---------------------------------------------------------------------------
# Wrappers
# ---------------------------------------------------------------------------

def _pixel_tile(p, tp_max=1024):
    """Largest lane-dense (multiple-of-128) tile <= p, or the full extent if p < 128."""
    if p <= 128:
        return p
    return min(tp_max, (p // 128) * 128)


def da_img_head(img_features, w1, b1, w2, b2, *, tp_max=1024):
    """Apply the shared DAImgHead to all FPN levels with a single pallas_call.

    Levels are reshaped (free) to (N, C, H*W) and concatenated along the pixel axis;
    the 1x1 convolutions are per-pixel, so tiles may straddle level boundaries.
    Returns ([logits NCHW per level], [sigmoid NCHW per level]).
    """
    N, C = img_features[0].shape[:2]
    assert all(f.shape[0] == N and f.shape[1] == C for f in img_features)
    hw = [(f.shape[2], f.shape[3]) for f in img_features]
    x_all = jnp.concatenate(
        [f.reshape(N, C, h * w) for f, (h, w) in zip(img_features, hw)], axis=-1)
    P = x_all.shape[-1]
    hid = w1.shape[1]
    tp = _pixel_tile(P, tp_max)
    grid = (N, pl.cdiv(P, tp))          # ragged last tile handled by masking

    # Pre-transpose the (tiny) weights for the (C, pixels) layout and cast to bf16
    # for the MXU; accumulation stays f32 inside the kernel.
    w1t = jnp.transpose(w1).astype(jnp.bfloat16)      # (hid, C)
    w2t = jnp.transpose(w2).astype(jnp.bfloat16)      # (1, hid)
    b1c = b1.reshape(hid, 1).astype(jnp.float32)
    b2s = b2.reshape(1).astype(jnp.float32)           # scalar bias -> SMEM

    def _const(shape):
        # Grid-invariant operand: DMA'd once, single-buffered to save VMEM.
        return pl.BlockSpec(shape, lambda n, p: (0,) * len(shape),
                            pipeline_mode=pl.Buffered(1))

    out, sig = pl.pallas_call(
        _img_head_kernel,
        out_shape=(jax.ShapeDtypeStruct((N, 1, P), jnp.float32),
                   jax.ShapeDtypeStruct((N, 1, P), jnp.float32)),
        grid=grid,
        in_specs=[
            pl.BlockSpec((1, C, tp), lambda n, p: (n, 0, p)),    # pixel tile
            _const((hid, C)),                                    # conv1 weight^T
            _const((hid, 1)),                                    # conv1 bias
            _const((1, hid)),                                    # conv2 weight^T
            pl.BlockSpec(memory_space=pltpu.MemorySpace.SMEM),   # conv2 scalar bias
        ],
        out_specs=[
            pl.BlockSpec((1, 1, tp), lambda n, p: (n, 0, p)),    # lane-dense logits
            pl.BlockSpec((1, 1, tp), lambda n, p: (n, 0, p)),    # lane-dense sigmoid
        ],
        compiler_params=pltpu.CompilerParams(
            dimension_semantics=("parallel", "parallel")),
    )(x_all, w1t, b1c, w2t, b2s)

    # Split back per level and reshape to NCHW (N, 1, H, W) — cheap (channel dim 1).
    logits, sigs, off = [], [], 0
    for (h, w) in hw:
        sz = h * w
        logits.append(out[:, :, off:off + sz].reshape(N, 1, h, w))
        sigs.append(sig[:, :, off:off + sz].reshape(N, 1, h, w))
        off += sz
    return logits, sigs


def da_ins_head(da_ins_feature, w1, b1, w2, b2, w3, b3, *, tn_max=128):
    """AvgPool2d(7,7) + flatten + DAInsHead, tiled over instances. Input (N, C, 7, 7)."""
    N, C, Hh, Ww = da_ins_feature.shape
    assert Hh == 7 and Ww == 7, "resnet-backbone instance features are 7x7"
    S = Hh * Ww
    x = da_ins_feature.reshape(N, C, S)               # free reshape
    hid = w1.shape[1]
    tn = N if N <= tn_max else tn_max                 # instance tile (rows)
    grid = (pl.cdiv(N, tn),)

    w1b = w1.astype(jnp.bfloat16)
    w2b = w2.astype(jnp.bfloat16)                     # the big 1024x1024 FC: 2x fewer HBM bytes
    w3b = w3.astype(jnp.bfloat16)
    b1r = b1.reshape(1, hid).astype(jnp.float32)
    b2r = b2.reshape(1, hid).astype(jnp.float32)
    b3s = b3.reshape(1).astype(jnp.float32)           # scalar bias -> SMEM

    def _const(shape):
        return pl.BlockSpec(shape, lambda i: (0,) * len(shape),
                            pipeline_mode=pl.Buffered(1))

    out, sig = pl.pallas_call(
        _ins_head_kernel,
        out_shape=(jax.ShapeDtypeStruct((N, 1), jnp.float32),
                   jax.ShapeDtypeStruct((N, 1), jnp.float32)),
        grid=grid,
        in_specs=[
            pl.BlockSpec((tn, C, S), lambda i: (i, 0, 0)),       # instance tile
            _const((C, hid)),                                    # fc1 weight
            _const((1, hid)),                                    # fc1 bias
            _const((hid, hid)),                                  # fc2 weight
            _const((1, hid)),                                    # fc2 bias
            _const((hid, 1)),                                    # fc3 weight
            pl.BlockSpec(memory_space=pltpu.MemorySpace.SMEM),   # fc3 scalar bias
        ],
        out_specs=[
            pl.BlockSpec((tn, 1), lambda i: (i, 0)),
            pl.BlockSpec((tn, 1), lambda i: (i, 0)),
        ],
        compiler_params=pltpu.CompilerParams(dimension_semantics=("parallel",)),
    )(x, w1b, b1r, w2b, b2r, w3b, b3s)
    return out, sig


def domain_adaptation_forward(img_features, da_ins_feature, da_ins_labels, params,
                              training=False):
    """Mirrors DomainAdaptationModule.forward (resnet backbone, eval mode).

    GradientScalarLayer is the identity in the forward pass, so the GRL and consist
    branches see numerically identical activations; each head runs once and its
    sigmoid (the consist output) is produced by the same kernel.
    """
    del da_ins_labels  # only consumed by the (untranslated) loss evaluator

    da_img_features, da_img_consist_features = da_img_head(
        img_features, params["img_w1"], params["img_b1"],
        params["img_w2"], params["img_b2"])

    da_ins_features, da_ins_consist_features = da_ins_head(
        da_ins_feature, params["ins_w1"], params["ins_b1"],
        params["ins_w2"], params["ins_b2"], params["ins_w3"], params["ins_b3"])

    if training:
        # TODO(synk): loss_evaluator_origin (DA image/instance/consistency losses) and
        # the GradientScalarLayer custom_vjp (gradient reversal/scaling) are not
        # translated; only the eval-mode forward is reproduced here.
        pass

    losses = {}  # module returns {} outside of training
    feats = {
        "da_img_features": da_img_features,
        "da_ins_features": da_ins_features,
        "da_img_consist_features": da_img_consist_features,
        "da_ins_consist_features": da_ins_consist_features,
    }
    return losses, feats


# ---------------------------------------------------------------------------
# Parameters and pure-JAX reference
# ---------------------------------------------------------------------------

def make_params(key, c_img_in, c_ins_in, img_hidden=512, ins_hidden=1024):
    ks = jax.random.split(key, 10)
    s = 0.02
    # Weights stored (in, out) — transpose of the PyTorch (out, in) convention.
    return {
        "img_w1": s * jax.random.normal(ks[0], (c_img_in, img_hidden), jnp.float32),
        "img_b1": s * jax.random.normal(ks[1], (img_hidden,), jnp.float32),
        "img_w2": s * jax.random.normal(ks[2], (img_hidden, 1), jnp.float32),
        "img_b2": s * jax.random.normal(ks[3], (1,), jnp.float32),
        "ins_w1": s * jax.random.normal(ks[4], (c_ins_in, ins_hidden), jnp.float32),
        "ins_b1": s * jax.random.normal(ks[5], (ins_hidden,), jnp.float32),
        "ins_w2": s * jax.random.normal(ks[6], (ins_hidden, ins_hidden), jnp.float32),
        "ins_b2": s * jax.random.normal(ks[7], (ins_hidden,), jnp.float32),
        "ins_w3": s * jax.random.normal(ks[8], (ins_hidden, 1), jnp.float32),
        "ins_b3": s * jax.random.normal(ks[9], (1,), jnp.float32),
    }


def _reference_forward(img_features, da_ins_feature, params):
    """Pure-JAX f32 reference of the eval-mode forward (for correctness checking)."""
    img_logits = []
    for fea in img_features:
        x = jnp.transpose(fea, (0, 2, 3, 1))                                  # NHWC
        h = jax.nn.relu(jnp.einsum("nhwc,cd->nhwd", x, params["img_w1"])
                        + params["img_b1"])
        o = jnp.einsum("nhwd,do->nhwo", h, params["img_w2"]) + params["img_b2"]
        img_logits.append(jnp.transpose(o, (0, 3, 1, 2)))                     # (N,1,H,W)
    pooled = jnp.mean(da_ins_feature, axis=(2, 3))                            # avgpool 7x7
    h = jax.nn.relu(pooled @ params["ins_w1"] + params["ins_b1"])
    h = jax.nn.relu(h @ params["ins_w2"] + params["ins_b2"])
    ins_logits = h @ params["ins_w3"] + params["ins_b3"]                      # (N,1)
    return img_logits, ins_logits


if __name__ == "__main__":
    key = jax.random.PRNGKey(0)
    k_in, k_p = jax.random.split(key)
    k1, k2, k3, k4 = jax.random.split(k_in, 4)

    # Small synthetic shapes consistent with the module:
    #   img_features: list of NCHW backbone maps, C_img = 32
    #   da_ins_feature: (N_ins, C_ins, 7, 7); C_ins = res2_out * 2**(4-1) = 16*8 = 128
    N, C_IMG = 2, 32
    N_INS, C_INS = 8, 128
    img_features = [
        jax.random.normal(k1, (N, C_IMG, 16, 16), jnp.float32),
        jax.random.normal(k2, (N, C_IMG, 8, 8), jnp.float32),
    ]
    da_ins_feature = jax.random.normal(k3, (N_INS, C_INS, 7, 7), jnp.float32)
    da_ins_labels = (jax.random.uniform(k4, (N_INS,)) > 0.5).astype(jnp.int32)

    params = make_params(k_p, C_IMG, C_INS)

    losses, feats = domain_adaptation_forward(
        img_features, da_ins_feature, da_ins_labels, params, training=False)
    jax.block_until_ready(feats)

    # Correctness check against the pure-JAX f32 reference (kernels use bf16 inputs
    # on the MXU with f32 accumulation, hence the loose-ish tolerances).
    ref_img, ref_ins = _reference_forward(img_features, da_ins_feature, params)

    assert losses == {}                                   # eval-mode contract
    assert feats["da_img_features"][0].shape == (N, 1, 16, 16)
    assert feats["da_img_features"][1].shape == (N, 1, 8, 8)
    assert feats["da_ins_features"].shape == (N_INS, 1)

    for got, ref in zip(feats["da_img_features"], ref_img):
        assert bool(jnp.allclose(got, ref, rtol=1e-1, atol=5e-3)), "img logits mismatch"
    for got, ref in zip(feats["da_img_consist_features"], ref_img):
        assert bool(jnp.allclose(got, jax.nn.sigmoid(ref), rtol=1e-1, atol=5e-3)), \
            "img consist mismatch"
    assert bool(jnp.allclose(feats["da_ins_features"], ref_ins,
                             rtol=1e-1, atol=5e-3)), "ins logits mismatch"
    assert bool(jnp.allclose(feats["da_ins_consist_features"], jax.nn.sigmoid(ref_ins),
                             rtol=1e-1, atol=5e-3)), "ins consist mismatch"
    assert bool(jnp.all((feats["da_ins_consist_features"] > 0)
                        & (feats["da_ins_consist_features"] < 1)))
    print("KERNEL_OK")
</pallas_src>

<mosaic_0001>
module attributes {stable_mosaic.version = 11 : i64} {
  func.func @_img_head_kernel(%arg0: i32, %arg1: i32, %arg2: memref<1x32x256xf32, #tpu.memory_space<vmem>>, %arg3: memref<512x32xbf16, #tpu.memory_space<vmem>>, %arg4: memref<512x1xf32, #tpu.memory_space<vmem>>, %arg5: memref<1x512xbf16, #tpu.memory_space<vmem>>, %arg6: memref<1xf32, #tpu.memory_space<smem>>, %arg7: memref<1x1x256xf32, #tpu.memory_space<vmem>>, %arg8: memref<1x1x256xf32, #tpu.memory_space<vmem>>) attributes {dimension_semantics = [#tpu.dimension_semantics<parallel>, #tpu.dimension_semantics<parallel>], iteration_bounds = array<i64: 2, 2>, scalar_prefetch = 0 : i64, scratch_operands = 0 : i64, tpu.core_type = #tpu.core_type<tc>, window_params = [{transform_indices = @transform_0, window_bounds = array<i64: 1, 32, 256>}, {pipeline_mode = #tpu.pipeline_mode<synchronous>, transform_indices = @transform_1, window_bounds = array<i64: 512, 32>}, {pipeline_mode = #tpu.pipeline_mode<synchronous>, transform_indices = @transform_2, window_bounds = array<i64: 512, 1>}, {pipeline_mode = #tpu.pipeline_mode<synchronous>, transform_indices = @transform_3, window_bounds = array<i64: 1, 512>}, {transform_indices = @transform_4, window_bounds = array<i64: 1>}, {transform_indices = @transform_5, window_bounds = array<i64: 1, 1, 256>}, {transform_indices = @transform_6, window_bounds = array<i64: 1, 1, 256>}]} {
    %c0 = arith.constant 0 : index
    %c0_0 = arith.constant 0 : index
    %c0_1 = arith.constant 0 : index
    %0 = vector.load %arg2[%c0, %c0_0, %c0_1] : memref<1x32x256xf32, #tpu.memory_space<vmem>>, vector<1x32x256xf32>
    %1 = vector.shape_cast %0 : vector<1x32x256xf32> to vector<32x256xf32>
    %2 = arith.truncf %1 : vector<32x256xf32> to vector<32x256xbf16>
    %c0_2 = arith.constant 0 : index
    %c0_3 = arith.constant 0 : index
    %3 = vector.load %arg3[%c0_2, %c0_3] : memref<512x32xbf16, #tpu.memory_space<vmem>>, vector<512x32xbf16>
    %cst = arith.constant dense<0.000000e+00> : vector<512x256xf32>
    %4 = tpu.matmul %3, %2, %cst {dimension_numbers = #tpu.dot_dimension_numbers<[1], [0], [0], [1], [0, 0, 1, 1], [], []>} : vector<512x32xbf16>, vector<32x256xbf16>, vector<512x256xf32> -> vector<512x256xf32>
    %c0_4 = arith.constant 0 : index
    %c0_5 = arith.constant 0 : index
    %5 = vector.load %arg4[%c0_4, %c0_5] : memref<512x1xf32, #tpu.memory_space<vmem>>, vector<512x1xf32>
    %6 = vector.broadcast %5 : vector<512x1xf32> to vector<512x256xf32>
    %7 = arith.addf %4, %6 : vector<512x256xf32>
    %cst_6 = arith.constant 0.000000e+00 : f32
    %8 = vector.broadcast %cst_6 : f32 to vector<512x256xf32>
    %9 = arith.maximumf %7, %8 : vector<512x256xf32>
    %c0_7 = arith.constant 0 : index
    %c0_8 = arith.constant 0 : index
    %10 = vector.load %arg5[%c0_7, %c0_8] : memref<1x512xbf16, #tpu.memory_space<vmem>>, vector<1x512xbf16>
    %11 = arith.truncf %9 : vector<512x256xf32> to vector<512x256xbf16>
    %cst_9 = arith.constant dense<0.000000e+00> : vector<1x256xf32>
    %12 = tpu.matmul %10, %11, %cst_9 {dimension_numbers = #tpu.dot_dimension_numbers<[1], [0], [0], [1], [0, 0, 1, 1], [], []>} : vector<1x512xbf16>, vector<512x256xbf16>, vector<1x256xf32> -> vector<1x256xf32>
    %c0_10 = arith.constant 0 : index
    %13 = memref.load %arg6[%c0_10] : memref<1xf32, #tpu.memory_space<smem>>
    %14 = vector.broadcast %13 : f32 to vector<1x256xf32>
    %15 = arith.addf %12, %14 : vector<1x256xf32>
    %c0_11 = arith.constant 0 : index
    %c0_12 = arith.constant 0 : index
    %c0_13 = arith.constant 0 : index
    %16 = vector.load %arg7[%c0_11, %c0_12, %c0_13] : memref<1x1x256xf32, #tpu.memory_space<vmem>>, vector<1x1x256xf32>
    %17 = vector.shape_cast %16 : vector<1x1x256xf32> to vector<1x256xf32>
    %18 = vector.shape_cast %15 : vector<1x256xf32> to vector<1x1x256xf32>
    tpu.vector_store %arg7[%c0_11, %c0_12, %c0_13], %18 {strides = array<i32>} : memref<1x1x256xf32, #tpu.memory_space<vmem>>, vector<1x1x256xf32>,
    %19 = arith.negf %15 : vector<1x256xf32>
    %20 = math.exp %19 : vector<1x256xf32>
    %cst_14 = arith.constant 1.000000e+00 : f32
    %21 = vector.broadcast %cst_14 : f32 to vector<1x256xf32>
    %22 = arith.addf %21, %20 : vector<1x256xf32>
    %23 = arith.divf %21, %22 : vector<1x256xf32>
    %c0_15 = arith.constant 0 : index
    %c0_16 = arith.constant 0 : index
    %c0_17 = arith.constant 0 : index
    %24 = vector.load %arg8[%c0_15, %c0_16, %c0_17] : memref<1x1x256xf32, #tpu.memory_space<vmem>>, vector<1x1x256xf32>
    %25 = vector.shape_cast %24 : vector<1x1x256xf32> to vector<1x256xf32>
    %26 = vector.shape_cast %23 : vector<1x256xf32> to vector<1x1x256xf32>
    tpu.vector_store %arg8[%c0_15, %c0_16, %c0_17], %26 {strides = array<i32>} : memref<1x1x256xf32, #tpu.memory_space<vmem>>, vector<1x1x256xf32>,
    return
  }
  func.func @transform_0(%arg0: i32, %arg1: i32) -> (i32, i32, i32) {
    %c0_i32 = arith.constant 0 : i32
    %c0_i32_0 = arith.constant 0 : i32
    return %arg0, %c0_i32, %arg1 : i32, i32, i32
  }
  func.func @transform_1(%arg0: i32, %arg1: i32) -> (i32, i32) {
    %c0_i32 = arith.constant 0 : i32
    %c0_i32_0 = arith.constant 0 : i32
    %c0_i32_1 = arith.constant 0 : i32
    return %c0_i32, %c0_i32_0 : i32, i32
  }
  func.func @transform_2(%arg0: i32, %arg1: i32) -> (i32, i32) {
    %c0_i32 = arith.constant 0 : i32
    %c0_i32_0 = arith.constant 0 : i32
    %c0_i32_1 = arith.constant 0 : i32
    return %c0_i32, %c0_i32_0 : i32, i32
  }
  func.func @transform_3(%arg0: i32, %arg1: i32) -> (i32, i32) {
    %c0_i32 = arith.constant 0 : i32
    %c0_i32_0 = arith.constant 0 : i32
    %c0_i32_1 = arith.constant 0 : i32
    return %c0_i32, %c0_i32_0 : i32, i32
  }
  func.func @transform_4(%arg0: i32, %arg1: i32) -> i32 {
    %c0_i32 = arith.constant 0 : i32
    %c0_i32_0 = arith.constant 0 : i32
    return %c0_i32 : i32
  }
  func.func @transform_5(%arg0: i32, %arg1: i32) -> (i32, i32, i32) {
    %c0_i32 = arith.constant 0 : i32
    %c0_i32_0 = arith.constant 0 : i32
    return %arg0, %c0_i32, %arg1 : i32, i32, i32
  }
  func.func @transform_6(%arg0: i32, %arg1: i32) -> (i32, i32, i32) {
    %c0_i32 = arith.constant 0 : i32
    %c0_i32_0 = arith.constant 0 : i32
    return %arg0, %c0_i32, %arg1 : i32, i32, i32
  }
}

</mosaic_0001>

<bundles_post_ra>
// kernel: tpu_custom_call.1
= control target key start
LH: loop header
LB: loop body
LE: loop exit
PB: predicated region body
PF: predicated region fallthrough
CT: control target
= control target key end

     0   :  { %s3982_s0 = inlined_call_operand.vmem [shape: f32[2,32,320], index: 0, kind: input, shape index: {}]   ;;  %s3983_s1 = inlined_call_operand.vmem [shape: bf16[512,32], index: 1, kind: input, shape index: {}]   ;;  %s3984_s2 = inlined_call_operand.vmem [shape: f32[512,1], index: 2, kind: input, shape index: {}]   ;;  %s3985_s3 = inlined_call_operand.vmem [shape: bf16[1,512], index: 3, kind: input, shape index: {}]   ;;  %s3986_s4 = inlined_call_operand.<no memory space> [shape: f32[1], index: 4, kind: input, shape index: {}]   ;;  %s3987_s5 = inlined_call_operand.hbm [shape: f32[2,1,320], index: 5, kind: output, shape index: {0}]   ;;  %s3988_s6 = inlined_call_operand.hbm [shape: f32[2,1,320], index: 6, kind: output, shape index: {1}]  }
   0x1   :  { %3997 = sst [smem:[#allocation20_spill]] %s3982_s0 }
   0x2   :  { %12 = sst [smem:[#allocation2]] %s3986_s4 }
   0x3   :  { %13 = vsyncpa [#allocation5], 0 }
   0x4   :  { %15 = vsyncpa [#allocation5 + $0x1], 0 }
   0x5   :  { %16 = vsyncpa [#allocation7], 0 }
   0x6   :  { %18 = vsyncpa [#allocation7 + $0x1], 0  ;;  %s3055_s23 = smov 0   ;;  %s3057_s24 = smov 0  }
   0x7   :  { %s3059_s25 = smov 0   ;;  %s3061_s26 = smov 0  }
   0x8   :  { %s3063_s27 = smov 0   ;;  %s3065_s28 = smov 0  }
   0x9   :  { %s3067_s29 = smov 0   ;;  %s3069_s30 = smov 0  }
   0xa LB: > { %3998 = sst [smem:[#allocation10_spill]] %s2969_s28  ;;  %s2408_s4 = sadd.s32 4294967295, %s2977_s30   ;;  %s2977_s30 = sphi %s3069_s30, %s24_s30   ;;  %s2973_s29 = sphi %s3067_s29, %s4030_s29   ;;  %s2969_s28 = sphi %s3065_s28, %s4029_s28   ;;  %s2965_s27 = sphi %s3063_s27, %s4028_s27   ;;  %s2961_s26 = sphi %s3061_s26, %s4027_s26   ;;  %s2957_s25 = sphi %s3059_s25, %s4033_s25   ;;  %s2953_s24 = sphi %s3057_s24, %s4032_s24   ;;  %s2949_s23 = sphi %s3055_s23, %s4031_s23  }
   0xb   : > { %3999 = sst [smem:[#allocation11_spill]] %s2973_s29  ;;  %s2409_s7 = sadd.s32 4294967294, %s2977_s30  }
   0xc   : > { %s33_s8 = sadd.s32 1, %s2969_s28  ;;  %s36_s9 = sadd.s32 1, %s2973_s29 }
   0xd   : > { %p34_p0 = scmp.ge.s32.totalorder %s33_s8, 2  ;;  %p52_p1 = scmp.ne.s32.totalorder %s2957_s25, %s2953_s24 }
   0xe   : > { %p53_p2 = scmp.eq.s32.totalorder %s2977_s30, 0  ;;  %p168_p5 = scmp.eq.s32.totalorder %s2408_s4, 3 }
   0xf   : > { %s4035_s8 = smov (%p34_p0, %s33_s8), 0  ;;  %s4037_s9 = smov (!%p34_p0, %s36_s9), %s2973_s29 }
  0x10   : > { %4000 = sst [smem:[#allocation12_spill]] %s4035_s8  ;;  %s41_s10 = ssub.s32 %s2969_s28, %s4035_s8 }
  0x11   : > { %p3107_p3 = por %p53_p2, %p52_p1  ;;  %p38_p4 = scmp.ge.s32.totalorder %s4037_s9, 2 }
  0x12   : > { %p173_p6 = scmp.ne.s32.totalorder %s2953_s24, %s2949_s23  ;;  %p174_p7 = scmp.eq.s32.totalorder %s2409_s7, 3 }
  0x13   : > { %s4039_s9 = smov (%p38_p4, %s4037_s9), 0  ;;  %p3115_p8 = por %p168_p5, %p52_p1 }
  0x14   : > { %4002 = sst [smem:[#allocation13_spill]] %s4039_s9  ;;  %p3119_p9 = por %p174_p7, %p173_p6 }
  0x15   : > { %s40_s14 = ssub.s32 %s2973_s29, %s4039_s9  ;;  %s45_s16 = sadd.s32 1, %s2957_s25 }
  0x16   : > { %s42_s15 = sor.u32 %s41_s10, %s40_s14  ;;  %p2411_p11 = scmp.ge.s32.totalorder %s2977_s30, 4 }
  0x17   : > { %p43_p10 = scmp.eq.s32.totalorder %s42_s15, 0 }
  0x18   : > { %230 = sbr.rel (%p2411_p11) target bundleno = 119 (0x77), region = 32 }
  0x19   : > { %s3127_s17 = scalar_select %p43_p10, %s2957_s25, %s45_s16  }
  0x1f   : > { %233 = sbr.rel (!%p3107_p3) target bundleno = 119 (0x77), region = 36  ;;  %s235_s18 = sand.u32 (%p3107_p3), 1, %s2957_s25  }
  0x20   : > { %s2413_s19 = sshll.u32 (%p3107_p3), %s2969_s28, 1  ;;  %s2412_s20 = sshll.u32 (%p3107_p3), %s235_s18, 6 }
  0x21   : > { %s239_s21 = ssub.s32 (%p3107_p3), 3, %s2413_s19  ;;  %s2536_s22 = smul.u32 (%p3107_p3), 12, %s2973_s29 }
  0x22   : > { %p240_p12 = scmp.lt.s32.totalorder (%p3107_p3), %s239_s21, 2  ;;  %s4005_s0 = sld [smem:[#allocation20_spill]] (%p3107_p3) }
  0x23   : > { %s245_s4 = sadd.s32 (%p3107_p3), %s2536_s22, %s2413_s19  ;;  %s3142_s9 = scalar_lea.vmem (%p3107_p3), [#allocation3], %s2412_s20  }
  0x24   : > { %s2416_s10 = sshll.u32 (%p3107_p3), %s245_s4, 3 }
  0x26   : > { %s4041_s21 = smov (!%p240_p12, %s239_s21), 2 }
  0x27   : > { %s2414_s7 = sshll.u32 %s4041_s21, 9  ;;  %s3140_s11 = sshll.u32 %s4041_s21, 3 }
  0x28   : > { %s3138_s16 = scalar_lea.vmem %s4005_s0, %s2416_s10   ;;  %p2418_p13 = scmp.eq.s32.totalorder %s2414_s7, 0 }
  0x29   : > { %p252_p0 = scmp.lt.u32.totalorder (!%p2418_p13), %s3140_s11, 8 }
  0x2a   : > { %251 = sbr.rel (%p2418_p13) target bundleno = 119 (0x77), region = 40 }
  0x31   : > { %255 = sbr.rel (%p252_p0) target bundleno = 110 (0x6e), region = 44  ;;  %s3146_s18 = sand.u32 (!%p252_p0), 7, %s3140_s11  }
  0x32   : > { %p277_p1 = scmp.eq.s32.totalorder (!%p252_p0), %s3146_s18, 0  ;;  %p2419_p2 = scmp.ne.s32.totalorder (!%p252_p0), %s3146_s18, 0 }
  0x38   : > { %280 = sbr.rel (%p2419_p2) target bundleno = 80 (0x50), region = 59  ;;  %s281_s19 = sshrl.u32 (!%p2419_p2), %s3140_s11, 3 }
  0x39   : > { %s282_s21 = sshrl.u32 (!%p2419_p2), %s281_s19, 4  ;;  %s3151_s20 = sand.u32 (!%p2419_p2), 15, %s281_s19  }
  0x3a   : > { %s2522_s22 = sshll.u32 (!%p2419_p2), %s282_s21, 11  ;;  %p2426_p3 = scmp.le.s32.totalorder (!%p2419_p2), %s3151_s20, 0 }
  0x3b   : > { %s433_s4 = sshra.s32 (!%p2419_p2), %s2522_s22, 4 }
  0x3c   : > { %s3154_s7 = scalar_lea.vmem (!%p2419_p2), %s3138_s16, %s433_s4   ;;  %s3157_s10 = scalar_lea.vmem (!%p2419_p2), %s3142_s9, %s433_s4 [#allocation3]  }
  0x3f   : > { %2330 = sbr.rel (%p2426_p3) target bundleno = 80 (0x50), region = 186  ;;  %s4006_s14 = smov (!%p2426_p3), %s3157_s10 }
  0x40   : > { %s4007_s15 = smov (!%p2426_p3), %s3154_s7  ;;  %s3166_s0 = smov (!%p2426_p3), 0  }
  0x41   : > { %s2991_s8 = smov (!%p2426_p3), 0  }
  0x46 LB: >> { %v449_v0 = vld [vmem:[%s2985_s15] sm:$0xff]  ;;  %v451_v1 = vld [vmem:[%s2985_s15 + $0x18] sm:$0xff]  ;;  %v453_v2 = vld [vmem:[%s2985_s15 + $0x30] sm:$0xff]  ;;  %s457_s19 = sadd.s32 1, %s2989_s0  ;;  %s443_s8 = sadd.s32 1, %s2993_s8   ;;  %s2993_s8 = sphi %s2991_s8, %s443_s8   ;;  %s2989_s0 = sphi %s3166_s0, %s4008_s0   ;;  %s2985_s15 = sphi %s4007_s15, %s462_s15   ;;  %s2981_s14 = sphi %s4006_s14, %s463_s14  }
  0x47   : >> { %450 = vst [vmem:[%s2981_s14] sm:$0xff] %v449_v0  ;;  %452 = vst [vmem:[%s2981_s14 + $0x10] sm:$0xff] %v451_v1  ;;  %v455_v3 = vld [vmem:[%s2985_s15 + $0x48] sm:$0xff]  ;;  %p458_p4 = scmp.ge.s32.totalorder %s457_s19, %s3151_s20  ;;  %p442_p5 = scmp.ge.s32.totalorder %s443_s8, %s3151_s20 }
  0x48   : >> { %454 = vst [vmem:[%s2981_s14 + $0x20] sm:$0xff] %v453_v2  ;;  %456 = vst [vmem:[%s2981_s14 + $0x30] sm:$0xff] %v455_v3 }
  0x49   : >> { %s4043_s19 = smov (%p458_p4, %s457_s19), 0  ;;  %445 = sbr.rel (!%p442_p5) target bundleno = 70 (0x46), region = 192 }
  0x4a   : >> { %s2427_s21 = sshll.u32 %s4043_s19, 3  ;;  %s4008_s0 = smov %s4043_s19 }
  0x4b   : >> { %s462_s15 = scalar_lea.vmem %s3154_s7, %s2427_s21   ;;  %s463_s14 = scalar_lea.vmem %s3157_s10, %s2427_s21 [#allocation3]  }
  0x50 PF: > { %466 = sbr.rel (%p277_p1) target bundleno = 110 (0x6e), region = 77  ;;  %s468_s0 = ssub.s32 (!%p277_p1), %s3140_s11, %s3146_s18 }
  0x51   : > { %s472_s22 = sshrl.u32 (!%p277_p1), %s3140_s11, 3  ;;  %s3187_s4 = scalar_lea.vmem (!%p277_p1), %s3138_s16, %s468_s0 }
  0x52   : > { %s3190_s21 = scalar_lea.vmem (!%p277_p1), %s3142_s9, %s468_s0 [#allocation3]  ;;  %s473_s8 = sshrl.u32 (!%p277_p1), %s472_s22, 4 }
  0x53   : > { %s3192_s19 = sand.u32 (!%p277_p1), 15, %s472_s22   ;;  %s2524_s20 = sshll.u32 (!%p277_p1), %s473_s8, 11 }
  0x54   : > { %s624_s7 = sshra.s32 (!%p277_p1), %s2524_s20, 4  ;;  %p2435_p6 = scmp.le.s32.totalorder (!%p277_p1), %s3192_s19, 0 }
  0x55   : > { %s3195_s10 = scalar_lea.vmem (!%p277_p1), %s3138_s16, %s624_s7   ;;  %s3198_s14 = scalar_lea.vmem (!%p277_p1), %s3142_s9, %s624_s7 [#allocation3]  }
  0x57   : > { %2358 = sbr.rel (%p2435_p6) target bundleno = 104 (0x68), region = 208  ;;  %s4009_s15 = smov (!%p2435_p6), %s3198_s14 }
  0x58   : > { %s4010_s29 = smov (!%p2435_p6), %s3195_s10  ;;  %s3207_s0 = smov (!%p2435_p6), 0  }
  0x59   : > { %s3007_s28 = smov (!%p2435_p6), 0  }
  0x5e LB: >> { %v640_v4 = vld [vmem:[%s3001_s29] sm:$0xff]  ;;  %v642_v5 = vld [vmem:[%s3001_s29 + $0x18] sm:$0xff]  ;;  %v644_v6 = vld [vmem:[%s3001_s29 + $0x30] sm:$0xff]  ;;  %s648_s22 = sadd.s32 1, %s3005_s0  ;;  %s634_s28 = sadd.s32 1, %s3009_s28   ;;  %s3009_s28 = sphi %s3007_s28, %s634_s28   ;;  %s3005_s0 = sphi %s3207_s0, %s4011_s0   ;;  %s3001_s29 = sphi %s4010_s29, %s653_s29   ;;  %s2997_s15 = sphi %s4009_s15, %s654_s15  }
  0x5f   : >> { %641 = vst [vmem:[%s2997_s15] sm:$0xff] %v640_v4  ;;  %643 = vst [vmem:[%s2997_s15 + $0x10] sm:$0xff] %v642_v5  ;;  %v646_v7 = vld [vmem:[%s3001_s29 + $0x48] sm:$0xff]  ;;  %p649_p7 = scmp.ge.s32.totalorder %s648_s22, %s3192_s19  ;;  %p633_p10 = scmp.ge.s32.totalorder %s634_s28, %s3192_s19 }
  0x60   : >> { %645 = vst [vmem:[%s2997_s15 + $0x20] sm:$0xff] %v644_v6  ;;  %647 = vst [vmem:[%s2997_s15 + $0x30] sm:$0xff] %v646_v7 }
  0x61   : >> { %s4045_s22 = smov (%p649_p7, %s648_s22), 0  ;;  %636 = sbr.rel (!%p633_p10) target bundleno = 94 (0x5e), region = 214 }
  0x62   : >> { %s2436_s8 = sshll.u32 %s4045_s22, 3  ;;  %s4011_s0 = smov %s4045_s22 }
  0x63   : >> { %s653_s29 = scalar_lea.vmem %s3195_s10, %s2436_s8   ;;  %s654_s15 = scalar_lea.vmem %s3198_s14, %s2436_s8 [#allocation3]  }
  0x68 PF: > { %s3011_s20 = smov 0  }
  0x69   : > { %s655_s7 = sshllo.u32 %s3011_s20, %s3146_s18 }
  0x6a   : > { %v664_v8 = vld [vmem:[%s3187_s4] sm:%s655_s7]  ;;  %v666_v9 = vld [vmem:[%s3187_s4 + $0x18] sm:%s655_s7] }
  0x6b   : > { %665 = vst [vmem:[%s3190_s21] sm:%s655_s7] %v664_v8  ;;  %667 = vst [vmem:[%s3190_s21 + $0x10] sm:%s655_s7] %v666_v9 }
  0x6c   : > { %v668_v10 = vld [vmem:[%s3187_s4 + $0x30] sm:%s655_s7]  ;;  %v670_v11 = vld [vmem:[%s3187_s4 + $0x48] sm:%s655_s7] }
  0x6d   : > { %669 = vst [vmem:[%s3190_s21 + $0x20] sm:%s655_s7] %v668_v10  ;;  %671 = vst [vmem:[%s3190_s21 + $0x30] sm:%s655_s7] %v670_v11 }
  0x6e PF: > { %p2438_p11 = scmp.ge.u32.totalorder %s3140_s11, 8 }
  0x6f   : > { %s3012_s28 = smov (!%p2438_p11), 0  }
  0x70   : > { %258 = sbr.rel (%p2438_p11) target bundleno = 119 (0x77), region = 48  ;;  %s259_s29 = sshllo.u32 (!%p2438_p11), %s3012_s28, %s3140_s11 }
  0x71   : > { %v268_v12 = vld [vmem:[%s3138_s16] sm:%s259_s29] (!%p2438_p11)  ;;  %v270_v13 = vld [vmem:[%s3138_s16 + $0x18] sm:%s259_s29] (!%p2438_p11) }
  0x72   : > { %269 = vst [vmem:[%s3142_s9] sm:%s259_s29] (!%p2438_p11), %v268_v12  ;;  %271 = vst [vmem:[%s3142_s9 + $0x10] sm:%s259_s29] (!%p2438_p11), %v270_v13 }
  0x73   : > { %v272_v14 = vld [vmem:[%s3138_s16 + $0x30] sm:%s259_s29] (!%p2438_p11)  ;;  %v274_v15 = vld [vmem:[%s3138_s16 + $0x48] sm:%s259_s29] (!%p2438_p11) }
  0x74   : > { %273 = vst [vmem:[%s3142_s9 + $0x20] sm:%s259_s29] (!%p2438_p11), %v272_v14  ;;  %275 = vst [vmem:[%s3142_s9 + $0x30] sm:%s259_s29] (!%p2438_p11), %v274_v15 }
  0x77 PF: > { %p2439_p12 = scmp.ge.s32.totalorder %s2977_s30, 1  ;;  %p674_p13 = scmp.lt.s32.totalorder %s2977_s30, 5 }
  0x79   : > { %p675_p0 = pnand %p2439_p12, %p674_p13 }
  0x7b   : > { %678 = sbr.rel (%p675_p0) target bundleno = 884 (0x374), region = 102 }
  0x82   : > { %s3244_s11 = sand.u32 1, %s2953_s24   ;;  %v3013_v16 = vmov 0   ;;  %v807_v29 = vld [vmem:[%s3984_s2] sm:$0xff]  ;;  %v2748_v31 = vld [vmem:[%s3983_s1 + $0xa8] sm:$0xff]   ;;  %v809_v33 = vld [vmem:[%s3984_s2 + $0x10] sm:$0xff]  ;;  %vm1351_vm0 = vcmask 261120  }
  0x83   : > { %s2440_s18 = sshll.u32 %s3244_s11, 6  ;;  %1480 = vmatprep.mubr.bf16.mxu0 %v3013_v16  ;;  %1690 = vmatprep.mubr.bf16.mxu1 %v3013_v16  ;;  %v2747_v30 = vld [vmem:[%s3983_s1] sm:$0xff]   ;;  %v808_v32 = vld [vmem:[%s3984_s2 + $0x8] sm:$0xff]  ;;  %v810_v34 = vld [vmem:[%s3984_s2 + $0x18] sm:$0xff]  ;;  %s1994_s21 = sld [smem:[#allocation2]] }
  0x84   : > { %2745 = vset.pattern.permute.xlu0 %v3013_v16  ;;  %2746 = vset.pattern.permute.xlu1 %v3013_v16  ;;  %s683_s9 = scalar_lea.vmem [#allocation3], %s2440_s18  ;;  %v811_v35 = vld [vmem:[%s3984_s2 + $0x20] sm:$0xff]  ;;  %v2749_v36 = vld [vmem:[%s3983_s1 + $0x8] sm:$0xff]   ;;  %v2750_v37 = vld [vmem:[%s3983_s1 + $0xb0] sm:$0xff]   ;;  %s2441_s19 = sshll.u32 %s3244_s11, 1 }
  0x85   : > { %v732_v17 = vld [vmem:[%s683_s9 + $0x8] sm:$0xff]  ;;  %v734_v18 = vld [vmem:[%s683_s9 + $0x18] sm:$0xff]  ;;  %v731_v19 = vld [vmem:[%s683_s9] sm:$0xff]  ;;  %873 = vperm.xlu0 %2745, %v807_v29   ;;  %883 = vperm.xlu1 %2746, %v809_v33   ;;  %s3866_s10 = scalar_lea.vmem [#allocation4], %s2441_s19  ;;  %s3873_s14 = scalar_lea.vmem [#allocation6], %s2441_s19 }
  0x86   : > { %v740_v20 = vpack.c.bf16 %v734_v18, %v732_v17  ;;  %v733_v21 = vld [vmem:[%s683_s9 + $0x10] sm:$0xff]  ;;  %v736_v22 = vld [vmem:[%s683_s9 + $0x28] sm:$0xff]  ;;  %v738_v23 = vld [vmem:[%s683_s9 + $0x38] sm:$0xff]  ;;  %s2162_s15 = scalar_lea.sflag [#allocation5], %s3244_s11  ;;  %s2167_s0 = scalar_lea.sflag [#allocation7], %s3244_s11 }
  0x87   : > { %v739_v24 = vpack.c.bf16 %v733_v21, %v731_v19  ;;  %v742_v25 = vpack.c.bf16 %v738_v23, %v736_v22  ;;  %v735_v26 = vld [vmem:[%s683_s9 + $0x20] sm:$0xff]  ;;  %v737_v27 = vld [vmem:[%s683_s9 + $0x30] sm:$0xff]  ;;  %v812_v38 = vld [vmem:[%s3984_s2 + $0x28] sm:$0xff]  ;;  %s2512_s22 = sshll.u32 (%p3115_p8), %s2961_s26, 1 }
  0x88   : > { %1448 = vmatprep.subr.bf16.mxu0 %v740_v20  ;;  %2526 = vmatprep.subr.bf16.mxu1 %v740_v20  ;;  %v741_v28 = vpack.c.bf16 %v737_v27, %v735_v26  ;;  %v813_v39 = vld [vmem:[%s3984_s2 + $0x30] sm:$0xff]  ;;  %v814_v40 = vld [vmem:[%s3984_s2 + $0x38] sm:$0xff]  ;;  %v815_v41 = vld [vmem:[%s3984_s2 + $0x40] sm:$0xff]  ;;  %s2175_s8 = ssub.s32 (%p3115_p8), 3, %s2512_s22 }
  0x89   : > { %1449 = vmatpush1.bf16.msra.mxu0 %v739_v24  ;;  %2528 = vmatpush1.bf16.msra.mxu1 %v739_v24  ;;  %v816_v42 = vld [vmem:[%s3984_s2 + $0x48] sm:$0xff]  ;;  %v2751_v43 = vld [vmem:[%s3983_s1 + $0x10] sm:$0xff]   ;;  %v2752_v44 = vld [vmem:[%s3983_s1 + $0xb8] sm:$0xff]   ;;  %p2176_p1 = scmp.lt.s32.totalorder (%p3115_p8), %s2175_s8, 2 }
  0x8a   : > { %1450 = vmatprep.subr.bf16.mxu0 %v742_v25  ;;  %2527 = vmatprep.subr.bf16.mxu1 %v742_v25  ;;  %v817_v45 = vld [vmem:[%s3984_s2 + $0x50] sm:$0xff]  ;;  %v818_v46 = vld [vmem:[%s3984_s2 + $0x58] sm:$0xff]  ;;  %v819_v47 = vld [vmem:[%s3984_s2 + $0x60] sm:$0xff] }
  0x8b   : > { %878 = vperm.xlu0 %2745, %v808_v32   ;;  %888 = vperm.xlu1 %2746, %v810_v34   ;;  %v2753_v48 = vld [vmem:[%s3983_s1 + $0x18] sm:$0xff]   ;;  %v2754_v49 = vld [vmem:[%s3983_s1 + $0xc0] sm:$0xff]   ;;  %v820_v50 = vld [vmem:[%s3984_s2 + $0x68] sm:$0xff] }
  0x8c   : > { %v821_v51 = vld [vmem:[%s3984_s2 + $0x70] sm:$0xff]  ;;  %v822_v52 = vld [vmem:[%s3984_s2 + $0x78] sm:$0xff]  ;;  %v823_v53 = vld [vmem:[%s3984_s2 + $0x80] sm:$0xff] }
  0x8d   : > { %1451 = vmatpush1.bf16.msra.mxu0 %v741_v28  ;;  %2529 = vmatpush1.bf16.msra.mxu1 %v741_v28  ;;  %v2755_v54 = vld [vmem:[%s3983_s1 + $0x20] sm:$0xff]   ;;  %v2756_v55 = vld [vmem:[%s3983_s1 + $0xc8] sm:$0xff]   ;;  %v825_v57 = vld [vmem:[%s3984_s2 + $0x90] sm:$0xff] }
  0x8e   : > { %v824_v56 = vld [vmem:[%s3984_s2 + $0x88] sm:$0xff]  ;;  %v826_v58 = vld [vmem:[%s3984_s2 + $0x98] sm:$0xff]  ;;  %v827_v59 = vld [vmem:[%s3984_s2 + $0xa0] sm:$0xff] }
  0x8f   : > { %893 = vperm.xlu0 %2745, %v811_v35   ;;  %898 = vperm.xlu1 %2746, %v812_v38   ;;  %v828_v60 = vld [vmem:[%s3984_s2 + $0xa8] sm:$0xff]  ;;  %v2758_v62 = vld [vmem:[%s3983_s1 + $0xd0] sm:$0xff]   ;;  %v830_v0 = vld [vmem:[%s3984_s2 + $0xb8] sm:$0xff] }
  0x90   : > { %2475 = vmatmul.mubr.msk.bf16.vlgmr.msra.gmra.mrb[0].mxu0 %vm1351_vm0, %v2747_v30  ;;  %2496 = vmatmul.mubr.msk.bf16.vlgmr.msra.gmra.mrb[0].mxu1 %vm1351_vm0, %v2748_v31  ;;  %v2757_v61 = vld [vmem:[%s3983_s1 + $0x28] sm:$0xff]   ;;  %v829_v63 = vld [vmem:[%s3984_s2 + $0xb0] sm:$0xff]  ;;  %v831_v1 = vld [vmem:[%s3984_s2 + $0xc0] sm:$0xff] }
  0x91   : > { %1490 = vmatprep.mubr.bf16.mxu0 %v3013_v16  ;;  %1700 = vmatprep.mubr.bf16.mxu1 %v3013_v16  ;;  %v832_v2 = vld [vmem:[%s3984_s2 + $0xc8] sm:$0xff]  ;;  %v2759_v3 = vld [vmem:[%s3983_s1 + $0x30] sm:$0xff]   ;;  %v2760_v4 = vld [vmem:[%s3983_s1 + $0xd8] sm:$0xff]  }
  0x92   : > { %v833_v5 = vld [vmem:[%s3984_s2 + $0xd0] sm:$0xff]  ;;  %v834_v6 = vld [vmem:[%s3984_s2 + $0xd8] sm:$0xff]  ;;  %v835_v7 = vld [vmem:[%s3984_s2 + $0xe0] sm:$0xff] }
  0x93   : > { %903 = vperm.xlu0 %2745, %v813_v39   ;;  %908 = vperm.xlu1 %2746, %v814_v40   ;;  %v836_v8 = vld [vmem:[%s3984_s2 + $0xe8] sm:$0xff]  ;;  %v2761_v9 = vld [vmem:[%s3983_s1 + $0x38] sm:$0xff]   ;;  %v2762_v10 = vld [vmem:[%s3983_s1 + $0xe0] sm:$0xff]  }
  0x94   : > { %v837_v11 = vld [vmem:[%s3984_s2 + $0xf0] sm:$0xff]  ;;  %v838_v12 = vld [vmem:[%s3984_s2 + $0xf8] sm:$0xff]  ;;  %v839_v13 = vld [vmem:[%s3984_s2 + $0x100] sm:$0xff] }
  0x95   : > { %v840_v14 = vld [vmem:[%s3984_s2 + $0x108] sm:$0xff]  ;;  %v2763_v15 = vld [vmem:[%s3983_s1 + $0x40] sm:$0xff]   ;;  %v841_v18 = vld [vmem:[%s3984_s2 + $0x110] sm:$0xff] }
  0x96   : > { %v2764_v17 = vld [vmem:[%s3983_s1 + $0xe8] sm:$0xff]   ;;  %v842_v19 = vld [vmem:[%s3984_s2 + $0x118] sm:$0xff]  ;;  %v843_v20 = vld [vmem:[%s3984_s2 + $0x120] sm:$0xff] }
  0x97   : > { %913 = vperm.xlu0 %2745, %v815_v41   ;;  %918 = vperm.xlu1 %2746, %v816_v42   ;;  %v844_v21 = vld [vmem:[%s3984_s2 + $0x128] sm:$0xff]  ;;  %v2766_v23 = vld [vmem:[%s3983_s1 + $0xf0] sm:$0xff]   ;;  %v846_v25 = vld [vmem:[%s3984_s2 + $0x138] sm:$0xff] }
  0x98   : > { %2476 = vmatmul.mubr.msk.bf16.gmra.mrb[4].mxu0 %vm1351_vm0, %v2749_v36  ;;  %2497 = vmatmul.mubr.msk.bf16.gmra.mrb[4].mxu1 %vm1351_vm0, %v2750_v37  ;;  %v2765_v22 = vld [vmem:[%s3983_s1 + $0x48] sm:$0xff]   ;;  %v845_v24 = vld [vmem:[%s3984_s2 + $0x130] sm:$0xff]  ;;  %v847_v26 = vld [vmem:[%s3984_s2 + $0x140] sm:$0xff] }
  0x99   : > { %1500 = vmatprep.mubr.bf16.mxu0 %v3013_v16  ;;  %1710 = vmatprep.mubr.bf16.mxu1 %v3013_v16  ;;  %v848_v27 = vld [vmem:[%s3984_s2 + $0x148] sm:$0xff]  ;;  %v2767_v28 = vld [vmem:[%s3983_s1 + $0x50] sm:$0xff]   ;;  %v2768_v29 = vld [vmem:[%s3983_s1 + $0xf8] sm:$0xff]  }
  0x9a   : > { %v849_v30 = vld [vmem:[%s3984_s2 + $0x150] sm:$0xff]  ;;  %v850_v31 = vld [vmem:[%s3984_s2 + $0x158] sm:$0xff]  ;;  %v851_v32 = vld [vmem:[%s3984_s2 + $0x160] sm:$0xff] }
  0x9b   : > { %923 = vperm.xlu0 %2745, %v817_v45   ;;  %928 = vperm.xlu1 %2746, %v818_v46   ;;  %v852_v33 = vld [vmem:[%s3984_s2 + $0x168] sm:$0xff]  ;;  %v2769_v34 = vld [vmem:[%s3983_s1 + $0x58] sm:$0xff]   ;;  %v853_v35 = vld [vmem:[%s3984_s2 + $0x170] sm:$0xff] }
  0x9c   : > { %v854_v36 = vld [vmem:[%s3984_s2 + $0x178] sm:$0xff]  ;;  %v855_v37 = vld [vmem:[%s3984_s2 + $0x180] sm:$0xff]  ;;  %v856_v38 = vld [vmem:[%s3984_s2 + $0x188] sm:$0xff] }
  0x9d   : > { %v2770_v39 = vld [vmem:[%s3983_s1 + $0x60] sm:$0xff]   ;;  %v857_v40 = vld [vmem:[%s3984_s2 + $0x190] sm:$0xff]  ;;  %v858_v41 = vld [vmem:[%s3984_s2 + $0x198] sm:$0xff] }
  0x9e   : > { %v859_v42 = vld [vmem:[%s3984_s2 + $0x1a0] sm:$0xff]  ;;  %v861_v45 = vld [vmem:[%s3984_s2 + $0x1b0] sm:$0xff]  ;;  %v862_v46 = vld [vmem:[%s3984_s2 + $0x1b8] sm:$0xff] }
  0x9f   : > { %933 = vperm.xlu0 %2745, %v819_v47   ;;  %938 = vperm.xlu1 %2746, %v820_v50   ;;  %v863_v47 = vld [vmem:[%s3984_s2 + $0x1c0] sm:$0xff]  ;;  %v865_v50 = vld [vmem:[%s3984_s2 + $0x1d0] sm:$0xff] }
  0xa0   : > { %2477 = vmatmul.mubr.msk.bf16.gmra.mrb[8].mxu0 %vm1351_vm0, %v2751_v43  ;;  %2498 = vmatmul.mubr.msk.bf16.gmra.mrb[8].mxu1 %vm1351_vm0, %v2752_v44  ;;  %v860_v43 = vld [vmem:[%s3984_s2 + $0x1a8] sm:$0xff] }
  0xa1   : > { %1510 = vmatprep.mubr.bf16.mxu0 %v3013_v16  ;;  %1720 = vmatprep.mubr.bf16.mxu1 %v3013_v16  ;;  %v2771_v44 = vld [vmem:[%s3983_s1 + $0x68] sm:$0xff]  }
  0xa3   : > { %943 = vperm.xlu0 %2745, %v821_v51   ;;  %948 = vperm.xlu1 %2746, %v822_v52   ;;  %v866_v51 = vld [vmem:[%s3984_s2 + $0x1d8] sm:$0xff]  ;;  %v867_v52 = vld [vmem:[%s3984_s2 + $0x1e0] sm:$0xff] }
  0xa7   : > { %953 = vperm.xlu0 %2745, %v823_v53   ;;  %958 = vperm.xlu1 %2746, %v824_v56   ;;  %v868_v53 = vld [vmem:[%s3984_s2 + $0x1e8] sm:$0xff]  ;;  %v870_v56 = vld [vmem:[%s3984_s2 + $0x1f8] sm:$0xff] }
  0xa8   : > { %2478 = vmatmul.mubr.msk.bf16.gmra.mrb[12].mxu0 %vm1351_vm0, %v2753_v48  ;;  %2499 = vmatmul.mubr.msk.bf16.gmra.mrb[12].mxu1 %vm1351_vm0, %v2754_v49  ;;  %v864_v48 = vld [vmem:[%s3984_s2 + $0x1c8] sm:$0xff]  ;;  %v2772_v49 = vld [vmem:[%s3983_s1 + $0x70] sm:$0xff]  }
  0xa9   : > { %1520 = vmatprep.mubr.bf16.mxu0 %v3013_v16  ;;  %1730 = vmatprep.mubr.bf16.mxu1 %v3013_v16 }
  0xab   : > { %963 = vperm.xlu0 %2745, %v825_v57   ;;  %968 = vperm.xlu1 %2746, %v826_v58   ;;  %v2774_v58 = vld [vmem:[%s3983_s1 + $0x80] sm:$0xff]  }
  0xaf   : > { %973 = vperm.xlu0 %2745, %v827_v59   ;;  %978 = vperm.xlu1 %2746, %v828_v60  }
  0xb0   : > { %2479 = vmatmul.mubr.msk.bf16.gmra.mrb[16].mxu0 %vm1351_vm0, %v2755_v54  ;;  %2500 = vmatmul.mubr.msk.bf16.gmra.mrb[16].mxu1 %vm1351_vm0, %v2756_v55  ;;  %v2773_v54 = vld [vmem:[%s3983_s1 + $0x78] sm:$0xff]   ;;  %v869_v55 = vld [vmem:[%s3984_s2 + $0x1f0] sm:$0xff] }
  0xb1   : > { %1530 = vmatprep.mubr.bf16.mxu0 %v3013_v16  ;;  %1740 = vmatprep.mubr.bf16.mxu1 %v3013_v16 }
  0xb3   : > { %983 = vperm.xlu0 %2745, %v829_v63   ;;  %988 = vperm.xlu1 %2746, %v830_v0   ;;  %v2775_v63 = vld [vmem:[%s3983_s1 + $0x88] sm:$0xff]  }
  0xb7   : > { %993 = vperm.xlu0 %2745, %v831_v1   ;;  %998 = vperm.xlu1 %2746, %v832_v2  }
  0xb8   : > { %2480 = vmatmul.mubr.msk.bf16.gmra.mrb[20].mxu0 %vm1351_vm0, %v2757_v61  ;;  %2501 = vmatmul.mubr.msk.bf16.gmra.mrb[20].mxu1 %vm1351_vm0, %v2758_v62 }
  0xb9   : > { %1540 = vmatprep.mubr.bf16.mxu0 %v3013_v16  ;;  %1750 = vmatprep.mubr.bf16.mxu1 %v3013_v16 }
  0xbb   : > { %1003 = vperm.xlu0 %2745, %v833_v5   ;;  %1008 = vperm.xlu1 %2746, %v834_v6  }
  0xbf   : > { %1013 = vperm.xlu0 %2745, %v835_v7   ;;  %1018 = vperm.xlu1 %2746, %v836_v8  }
  0xc0   : > { %2481 = vmatmul.mubr.msk.bf16.gmra.mrb[24].mxu0 %vm1351_vm0, %v2759_v3  ;;  %2502 = vmatmul.mubr.msk.bf16.gmra.mrb[24].mxu1 %vm1351_vm0, %v2760_v4  ;;  %v2776_v4 = vld [vmem:[%s3983_s1 + $0x90] sm:$0xff]  }
  0xc1   : > { %1550 = vmatprep.mubr.bf16.mxu0 %v3013_v16  ;;  %1760 = vmatprep.mubr.bf16.mxu1 %v3013_v16 }
  0xc3   : > { %1023 = vperm.xlu0 %2745, %v837_v11   ;;  %1028 = vperm.xlu1 %2746, %v838_v12  }
  0xc7   : > { %1033 = vperm.xlu0 %2745, %v839_v13   ;;  %1038 = vperm.xlu1 %2746, %v840_v14   ;;  %v2778_v14 = vld [vmem:[%s3983_s1 + $0xa0] sm:$0xff]  }
  0xc8   : > { %2482 = vmatmul.mubr.msk.bf16.gmra.mrb[28].mxu0 %vm1351_vm0, %v2761_v9  ;;  %2503 = vmatmul.mubr.msk.bf16.gmra.mrb[28].mxu1 %vm1351_vm0, %v2762_v10  ;;  %v2777_v9 = vld [vmem:[%s3983_s1 + $0x98] sm:$0xff]  }
  0xc9   : > { %1560 = vmatprep.mubr.bf16.mxu0 %v3013_v16  ;;  %1770 = vmatprep.mubr.bf16.mxu1 %v3013_v16 }
  0xcb   : > { %1043 = vperm.xlu0 %2745, %v841_v18   ;;  %1048 = vperm.xlu1 %2746, %v842_v19  }
  0xcf   : > { %1053 = vperm.xlu0 %2745, %v843_v20   ;;  %1058 = vperm.xlu1 %2746, %v844_v21  }
  0xd0   : > { %2483 = vmatmul.mubr.msk.bf16.gmra.mrb[32].mxu0 %vm1351_vm0, %v2763_v15  ;;  %2504 = vmatmul.mubr.msk.bf16.gmra.mrb[32].mxu1 %vm1351_vm0, %v2764_v17 }
  0xd1   : > { %1570 = vmatprep.mubr.bf16.mxu0 %v3013_v16  ;;  %1780 = vmatprep.mubr.bf16.mxu1 %v3013_v16 }
  0xd3   : > { %1063 = vperm.xlu0 %2745, %v845_v24   ;;  %1068 = vperm.xlu1 %2746, %v846_v25  }
  0xd7   : > { %1073 = vperm.xlu0 %2745, %v847_v26   ;;  %1078 = vperm.xlu1 %2746, %v848_v27  }
  0xd8   : > { %2484 = vmatmul.mubr.msk.bf16.gmra.mrb[36].mxu0 %vm1351_vm0, %v2765_v22  ;;  %2505 = vmatmul.mubr.msk.bf16.gmra.mrb[36].mxu1 %vm1351_vm0, %v2766_v23 }
  0xd9   : > { %1580 = vmatprep.mubr.bf16.mxu0 %v3013_v16  ;;  %1790 = vmatprep.mubr.bf16.mxu1 %v3013_v16 }
  0xdb   : > { %1083 = vperm.xlu0 %2745, %v849_v30   ;;  %1088 = vperm.xlu1 %2746, %v850_v31  }
  0xdf   : > { %1093 = vperm.xlu0 %2745, %v851_v32   ;;  %1098 = vperm.xlu1 %2746, %v852_v33  }
  0xe0   : > { %2485 = vmatmul.mubr.msk.bf16.gmra.mrb[40].mxu0 %vm1351_vm0, %v2767_v28  ;;  %2506 = vmatmul.mubr.msk.bf16.gmra.mrb[40].mxu1 %vm1351_vm0, %v2768_v29 }
  0xe1   : > { %1590 = vmatprep.mubr.bf16.mxu0 %v3013_v16 }
  0xe3   : > { %1103 = vperm.xlu0 %2745, %v853_v35   ;;  %1108 = vperm.xlu1 %2746, %v854_v36  }
  0xe7   : > { %1113 = vperm.xlu0 %2745, %v855_v37   ;;  %1118 = vperm.xlu1 %2746, %v856_v38  }
  0xe8   : > { %2486 = vmatmul.mubr.msk.bf16.gmra.mrb[44].mxu0 %vm1351_vm0, %v2769_v34 }
  0xe9   : > { %1600 = vmatprep.mubr.bf16.mxu0 %v3013_v16 }
  0xeb   : > { %1123 = vperm.xlu0 %2745, %v857_v40   ;;  %1128 = vperm.xlu1 %2746, %v858_v41  }
  0xef   : > { %1133 = vperm.xlu0 %2745, %v859_v42   ;;  %1138 = vperm.xlu1 %2746, %v860_v43  }
  0xf0   : > { %2487 = vmatmul.mubr.msk.bf16.gmra.mrb[48].mxu0 %vm1351_vm0, %v2770_v39 }
  0xf1   : > { %1610 = vmatprep.mubr.bf16.mxu0 %v3013_v16 }
  0xf3   : > { %1143 = vperm.xlu0 %2745, %v861_v45   ;;  %1148 = vperm.xlu1 %2746, %v862_v46  }
  0xf7   : > { %1153 = vperm.xlu0 %2745, %v863_v47   ;;  %1158 = vperm.xlu1 %2746, %v864_v48  }
  0xf8   : > { %2488 = vmatmul.mubr.msk.bf16.gmra.mrb[52].mxu0 %vm1351_vm0, %v2771_v44 }
  0xf9   : > { %1620 = vmatprep.mubr.bf16.mxu0 %v3013_v16 }
  0xfb   : > { %1163 = vperm.xlu0 %2745, %v865_v50   ;;  %1168 = vperm.xlu1 %2746, %v866_v51   ;;  %v3014_v51 = vmov 1966171168  }
  0xff   : > { %1173 = vperm.xlu0 %2745, %v867_v52   ;;  %1178 = vperm.xlu1 %2746, %v868_v53   ;;  %v2006_v52 = vunpack.c.l.s4 %v3014_v51  ;;  %v3996_v53 = vlaneseq }
 0x100   : > { %2489 = vmatmul.mubr.msk.bf16.gmra.mrb[56].mxu0 %vm1351_vm0, %v2772_v49 }
 0x101   : > { %1630 = vmatprep.mubr.bf16.mxu0 %v3013_v16 }
 0x103   : > { %1183 = vperm.xlu0 %2745, %v869_v55   ;;  %1188 = vperm.xlu1 %2746, %v870_v56  }
 0x104   : > { %v3577_v57 = vpop.permute.xlu0 %873  ;;  %v3582_v59 = vpop.permute.xlu1 %883 }
 0x108   : > { %2490 = vmatmul.mubr.msk.bf16.gmra.mrb[60].mxu0 %vm1351_vm0, %v2773_v54 }
 0x109   : > { %1640 = vmatprep.mubr.bf16.mxu0 %v3013_v16 }
 0x10a   : > { %v3584_v60 = vpop.permute.xlu0 %878  ;;  %v3588_v61 = vpop.permute.xlu1 %888 }
 0x10e   : > { %v3590_v62 = vpop.permute.xlu0 %893  ;;  %v3595_v0 = vpop.permute.xlu1 %898 }
 0x110   : > { %2491 = vmatmul.mubr.msk.bf16.gmra.mrb[64].mxu0 %vm1351_vm0, %v2774_v58 }
 0x111   : > { %1650 = vmatprep.mubr.bf16.mxu0 %v3013_v16 }
 0x112   : > { %v3597_v1 = vpop.permute.xlu0 %903  ;;  %v3601_v2 = vpop.permute.xlu1 %908 }
 0x116   : > { %v3603_v3 = vpop.permute.xlu0 %913  ;;  %v3608_v5 = vpop.permute.xlu1 %918 }
 0x118   : > { %2492 = vmatmul.mubr.msk.bf16.gmra.mrb[68].mxu0 %vm1351_vm0, %v2775_v63 }
 0x119   : > { %1660 = vmatprep.mubr.bf16.mxu0 %v3013_v16 }
 0x11a   : > { %v3610_v6 = vpop.permute.xlu0 %923  ;;  %v3614_v7 = vpop.permute.xlu1 %928 }
 0x11e   : > { %v3616_v8 = vpop.permute.xlu0 %933  ;;  %v3621_v10 = vpop.permute.xlu1 %938 }
 0x120   : > { %2493 = vmatmul.mubr.msk.bf16.gmra.mrb[72].mxu0 %vm1351_vm0, %v2776_v4 }
 0x121   : > { %1670 = vmatprep.mubr.bf16.mxu0 %v3013_v16 }
 0x122   : > { %v3623_v11 = vpop.permute.xlu0 %943  ;;  %v3627_v12 = vpop.permute.xlu1 %948 }
 0x126   : > { %v3629_v13 = vpop.permute.xlu0 %953  ;;  %v3634_v15 = vpop.permute.xlu1 %958 }
 0x128   : > { %2494 = vmatmul.mubr.msk.bf16.gmra.mrb[76].mxu0 %vm1351_vm0, %v2777_v9 }
 0x129   : > { %1680 = vmatprep.mubr.bf16.mxu0 %v3013_v16 }
 0x12a   : > { %v3636_v17 = vpop.permute.xlu0 %963  ;;  %v3639_v18 = vpop.permute.xlu1 %968 }
 0x12e   : > { %v3641_v19 = vpop.permute.xlu0 %973  ;;  %v3643_v20 = vpop.permute.xlu1 %978 }
 0x130   : > { %2495 = vmatmul.mubr.msk.bf16.gmra.mrb[80].mxu0 %vm1351_vm0, %v2778_v14  ;;  %v2007_v14 = vunpack.c.0.s8 %v2006_v52 }
 0x132   : > { %v3645_v16 = vpop.permute.xlu0 %983  ;;  %v3647_v21 = vpop.permute.xlu1 %988 }
 0x136   : > { %v3649_v22 = vpop.permute.xlu0 %993  ;;  %v3651_v23 = vpop.permute.xlu1 %998 }
 0x13a   : > { %v3653_v24 = vpop.permute.xlu0 %1003  ;;  %v3655_v25 = vpop.permute.xlu1 %1008 }
 0x13e   : > { %v3657_v26 = vpop.permute.xlu0 %1013  ;;  %v3659_v27 = vpop.permute.xlu1 %1018 }
 0x142   : > { %v3661_v28 = vpop.permute.xlu0 %1023  ;;  %v3663_v29 = vpop.permute.xlu1 %1028 }
 0x146   : > { %v3665_v30 = vpop.permute.xlu0 %1033  ;;  %v3667_v31 = vpop.permute.xlu1 %1038 }
 0x14a   : > { %v3669_v32 = vpop.permute.xlu0 %1043  ;;  %v3671_v33 = vpop.permute.xlu1 %1048 }
 0x14e   : > { %v3673_v34 = vpop.permute.xlu0 %1053  ;;  %v3675_v35 = vpop.permute.xlu1 %1058 }
 0x152   : > { %v3677_v36 = vpop.permute.xlu0 %1063  ;;  %v3679_v37 = vpop.permute.xlu1 %1068 }
 0x153   : > { %4012 = vst [vmem:[#allocation14_spill] sm:$0xff] %v3679_v37 }
 0x156   : > { %v3681_v38 = vpop.permute.xlu0 %1073  ;;  %v3683_v39 = vpop.permute.xlu1 %1078 }
 0x157   : > { %4013 = vst [vmem:[#allocation15_spill] sm:$0xff] %v3681_v38  ;;  %4014 = vst [vmem:[#allocation16_spill] sm:$0xff] %v3683_v39 }
 0x15a   : > { %v1084_v40 = vpop.permute.xlu0 %1083  ;;  %v1089_v41 = vpop.permute.xlu1 %1088 }
 0x15e   : > { %v1099_v51 = vpop.permute.xlu1 %1098 }
 0x163   : > { %v1482_v42 = vpop.f32.mrb[0].mxu0  ;;  %v1692_v43 = vpop.f32.mrb[0].mxu1 }
 0x164   : > { %v1483_v44 = vadd.f32 %v1482_v42, %v3577_v57  ;;  %v1484_v45 = vpop.f32.mrb[1].mxu0  ;;  %v1693_v46 = vadd.f32 %v1692_v43, %v1084_v40  ;;  %v1694_v47 = vpop.f32.mrb[1].mxu1 }
 0x165   : > { %v1485_v48 = vadd.f32 %v1484_v45, %v3577_v57  ;;  %v1486_v49 = vpop.f32.mrb[2].mxu0  ;;  %v1695_v50 = vadd.f32 %v1694_v47, %v1084_v40  ;;  %v1696_v9 = vpop.f32.mrb[2].mxu1  ;;  %v3692_v57 = vld.sshfl [vmem:[%s3985_s3] sm:$0x33 pattern:$0x75316420] }
 0x166   : > { %v1801_v54 = vmax.f32 %v1483_v44, 0.0  ;;  %v1487_v55 = vadd.f32 %v1486_v49, %v3584_v60  ;;  %v1488_v56 = vpop.f32.mrb[3].mxu0  ;;  %v1885_v4 = vmax.f32 %v1693_v46, 0.0  ;;  %v1697_v43 = vadd.f32 %v1696_v9, %v1089_v41  ;;  %v1698_v39 = vpop.f32.mrb[3].mxu1 }
 0x167   : > { %v1802_v58 = vmax.f32 %v1485_v48, 0.0  ;;  %v1489_v63 = vadd.f32 %v1488_v56, %v3584_v60  ;;  %v1886_v45 = vmax.f32 %v1695_v50, 0.0  ;;  %v1699_v44 = vadd.f32 %v1698_v39, %v1089_v41  ;;  %v1094_v48 = vpop.permute.xlu0 %1093 }
 0x168   : > { %v1803_v42 = vmax.f32 %v1487_v55, 0.0  ;;  %v2009_v47 = vshrl.u32 %v3996_v53, 7  ;;  %v1887_v60 = vmax.f32 %v1697_v43, 0.0  ;;  %v2004_v46 = vcombine.high %v3692_v57, %v3692_v57 }
 0x169   : > { %v1804_v40 = vmax.f32 %v1489_v63, 0.0  ;;  %v1888_v56 = vmax.f32 %v1699_v44, 0.0 }
 0x16a   : > { %v1930_v49 = vpack.c.bf16 %v1803_v42, %v1801_v54  ;;  %v3697_v38 = vsub.s32 %v2007_v14, %v2009_v47  ;;  %v3700_v50 = vpack.c.bf16 %v1887_v60, %v1885_v4 }
 0x16b   : > { %v1931_v52 = vpack.c.bf16 %v1804_v40, %v1802_v58  ;;  %v1492_v55 = vpop.f32.mrb[4].mxu0  ;;  %v1702_v9 = vpop.f32.mrb[4].mxu1  ;;  %v3703_v43 = vpack.c.bf16 %v1888_v56, %v1886_v45 }
 0x16c   : > { %v1493_v37 = vadd.f32 %v1492_v55, %v3582_v59  ;;  %v1494_v63 = vpop.f32.mrb[5].mxu0  ;;  %4015 = vst [vmem:[#allocation17_spill] sm:$0xff] %v3700_v50  ;;  %v1703_v39 = vadd.f32 %v1702_v9, %v1094_v48  ;;  %v1704_v41 = vpop.f32.mrb[5].mxu1  ;;  %v3707_v14 = vrot.slane %v2004_v46, %v3697_v38 }
 0x16d   : > { %v1495_v54 = vadd.f32 %v1494_v63, %v3582_v59  ;;  %v1496_v42 = vpop.f32.mrb[6].mxu0  ;;  %2025 = vmatprep.subr.bf16.mxu1 %v1931_v52  ;;  %4016 = vst [vmem:[#allocation18_spill] sm:$0xff] %v3703_v43  ;;  %v1705_v53 = vadd.f32 %v1704_v41, %v1094_v48  ;;  %v1706_v4 = vpop.f32.mrb[6].mxu1 }
 0x16e   : > { %v1497_v58 = vadd.f32 %v1496_v42, %v3588_v61  ;;  %v1498_v40 = vpop.f32.mrb[7].mxu0  ;;  %2026 = vmatpush1.bf16.msra.mxu1 %v1930_v49  ;;  %v1805_v47 = vmax.f32 %v1493_v37, 0.0  ;;  %v1889_v55 = vmax.f32 %v1703_v39, 0.0  ;;  %v1707_v9 = vadd.f32 %v1706_v4, %v1099_v51  ;;  %v1708_v59 = vpop.f32.mrb[7].mxu1  ;;  %2057 = vmatprep.mubr.bf16.mxu1 %v3707_v14 }
 0x16f   : > { %v1499_v44 = vadd.f32 %v1498_v40, %v3588_v61  ;;  %v1806_v45 = vmax.f32 %v1495_v54, 0.0  ;;  %v1890_v48 = vmax.f32 %v1705_v53, 0.0  ;;  %v1709_v56 = vadd.f32 %v1708_v59, %v1099_v51  ;;  %v1104_v41 = vpop.permute.xlu0 %1103  ;;  %v1109_v49 = vpop.permute.xlu1 %1108 }
 0x170   : > { %v1807_v60 = vmax.f32 %v1497_v58, 0.0  ;;  %v1891_v42 = vmax.f32 %v1707_v9, 0.0 }
 0x171   : > { %v1808_v52 = vmax.f32 %v1499_v44, 0.0  ;;  %v1892_v43 = vmax.f32 %v1709_v56, 0.0 }
 0x172   : > { %v1932_v63 = vpack.c.bf16 %v1807_v60, %v1805_v47  ;;  %v3712_v39 = vpack.c.bf16 %v1891_v42, %v1889_v55 }
 0x173   : > { %v1933_v46 = vpack.c.bf16 %v1808_v52, %v1806_v45  ;;  %v1502_v50 = vpop.f32.mrb[8].mxu0  ;;  %v1712_v61 = vpop.f32.mrb[8].mxu1  ;;  %v3715_v53 = vpack.c.bf16 %v1892_v43, %v1890_v48 }
 0x174   : > { %v1503_v37 = vadd.f32 %v1502_v50, %v3590_v62  ;;  %v1504_v58 = vpop.f32.mrb[9].mxu0  ;;  %4017 = vst [vmem:[#allocation19_spill] sm:$0xff] %v3712_v39  ;;  %v1713_v40 = vadd.f32 %v1712_v61, %v1104_v41  ;;  %v1714_v4 = vpop.f32.mrb[9].mxu1 }
 0x175   : > { %v1505_v54 = vadd.f32 %v1504_v58, %v3590_v62  ;;  %v1506_v44 = vpop.f32.mrb[10].mxu0  ;;  %2027 = vmatprep.subr.bf16.mxu1 %v1933_v46  ;;  %v1715_v51 = vadd.f32 %v1714_v4, %v1104_v41  ;;  %v1716_v47 = vpop.f32.mrb[10].mxu1 }
 0x176   : > { %v1507_v60 = vadd.f32 %v1506_v44, %v3595_v0  ;;  %v1508_v9 = vpop.f32.mrb[11].mxu0  ;;  %2028 = vmatpush1.bf16.msra.mxu1 %v1932_v63  ;;  %v1893_v59 = vmax.f32 %v1713_v40, 0.0  ;;  %v1717_v45 = vadd.f32 %v1716_v47, %v1109_v49  ;;  %v1809_v50 = vmax.f32 %v1503_v37, 0.0  ;;  %v1718_v52 = vpop.f32.mrb[11].mxu1 }
 0x177   : > { %v1509_v55 = vadd.f32 %v1508_v9, %v3595_v0  ;;  %v1894_v42 = vmax.f32 %v1715_v51, 0.0  ;;  %v1719_v62 = vadd.f32 %v1718_v52, %v1109_v49  ;;  %v1810_v58 = vmax.f32 %v1505_v54, 0.0  ;;  %v1114_v48 = vpop.permute.xlu0 %1113  ;;  %v1119_v41 = vpop.permute.xlu1 %1118 }
 0x178   : > { %v1811_v56 = vmax.f32 %v1507_v60, 0.0  ;;  %v1895_v61 = vmax.f32 %v1717_v45, 0.0 }
 0x179   : > { %v1812_v46 = vmax.f32 %v1509_v55, 0.0  ;;  %v1896_v44 = vmax.f32 %v1719_v62, 0.0 }
 0x17a   : > { %v1934_v43 = vpack.c.bf16 %v1811_v56, %v1809_v50  ;;  %v3719_v4 = vpack.c.bf16 %v1895_v61, %v1893_v59 }
 0x17b   : > { %v1935_v39 = vpack.c.bf16 %v1812_v46, %v1810_v58  ;;  %v1512_v63 = vpop.f32.mrb[12].mxu0  ;;  %v1722_v40 = vpop.f32.mrb[12].mxu1  ;;  %v3722_v0 = vpack.c.bf16 %v1896_v44, %v1894_v42 }
 0x17c   : > { %v1513_v37 = vadd.f32 %v1512_v63, %v3597_v1  ;;  %v1514_v47 = vpop.f32.mrb[13].mxu0  ;;  %v1723_v60 = vadd.f32 %v1722_v40, %v1114_v48  ;;  %v1724_v51 = vpop.f32.mrb[13].mxu1 }
 0x17d   : > { %v1515_v49 = vadd.f32 %v1514_v47, %v3597_v1  ;;  %v1516_v54 = vpop.f32.mrb[14].mxu0  ;;  %2029 = vmatprep.subr.bf16.mxu1 %v1935_v39  ;;  %v1725_v9 = vadd.f32 %v1724_v51, %v1114_v48  ;;  %v1726_v45 = vpop.f32.mrb[14].mxu1 }
 0x17e   : > { %v1517_v59 = vadd.f32 %v1516_v54, %v3601_v2  ;;  %v1518_v50 = vpop.f32.mrb[15].mxu0  ;;  %2030 = vmatpush1.bf16.msra.mxu1 %v1934_v43  ;;  %v1897_v55 = vmax.f32 %v1723_v60, 0.0  ;;  %v1727_v52 = vadd.f32 %v1726_v45, %v1119_v41  ;;  %v1728_v56 = vpop.f32.mrb[15].mxu1  ;;  %v1813_v58 = vmax.f32 %v1513_v37, 0.0 }
 0x17f   : > { %v1519_v61 = vadd.f32 %v1518_v50, %v3601_v2  ;;  %v1898_v62 = vmax.f32 %v1725_v9, 0.0  ;;  %v1729_v42 = vadd.f32 %v1728_v56, %v1119_v41  ;;  %v1814_v63 = vmax.f32 %v1515_v49, 0.0  ;;  %v1124_v48 = vpop.permute.xlu0 %1123  ;;  %v1129_v47 = vpop.permute.xlu1 %1128 }
 0x180   : > { %v1815_v46 = vmax.f32 %v1517_v59, 0.0  ;;  %v1899_v44 = vmax.f32 %v1727_v52, 0.0 }
 0x181   : > { %v1816_v1 = vmax.f32 %v1519_v61, 0.0  ;;  %v1900_v40 = vmax.f32 %v1729_v42, 0.0 }
 0x182   : > { %v1936_v39 = vpack.c.bf16 %v1815_v46, %v1813_v58  ;;  %v3727_v51 = vpack.c.bf16 %v1899_v44, %v1897_v55 }
 0x183   : > { %v1937_v54 = vpack.c.bf16 %v1816_v1, %v1814_v63  ;;  %v1522_v43 = vpop.f32.mrb[16].mxu0  ;;  %v3729_v60 = vpack.c.bf16 %v1900_v40, %v1898_v62  ;;  %v1732_v45 = vpop.f32.mrb[16].mxu1 }
 0x184   : > { %v1523_v2 = vadd.f32 %v1522_v43, %v3603_v3  ;;  %v1524_v9 = vpop.f32.mrb[17].mxu0  ;;  %v1733_v41 = vadd.f32 %v1732_v45, %v1124_v48  ;;  %v1734_v37 = vpop.f32.mrb[17].mxu1 }
 0x185   : > { %v1525_v59 = vadd.f32 %v1524_v9, %v3603_v3  ;;  %v1526_v49 = vpop.f32.mrb[18].mxu0  ;;  %2031 = vmatprep.subr.bf16.mxu1 %v1937_v54  ;;  %v1735_v50 = vadd.f32 %v1734_v37, %v1124_v48  ;;  %v1736_v52 = vpop.f32.mrb[18].mxu1 }
 0x186   : > { %v1527_v56 = vadd.f32 %v1526_v49, %v3608_v5  ;;  %v1528_v55 = vpop.f32.mrb[19].mxu0  ;;  %2032 = vmatpush1.bf16.msra.mxu1 %v1936_v39  ;;  %v1901_v61 = vmax.f32 %v1733_v41, 0.0  ;;  %v1737_v42 = vadd.f32 %v1736_v52, %v1129_v47  ;;  %v1738_v62 = vpop.f32.mrb[19].mxu1  ;;  %v1817_v63 = vmax.f32 %v1523_v2, 0.0 }
 0x187   : > { %v1529_v58 = vadd.f32 %v1528_v55, %v3608_v5  ;;  %v1902_v46 = vmax.f32 %v1735_v50, 0.0  ;;  %v1739_v44 = vadd.f32 %v1738_v62, %v1129_v47  ;;  %v1818_v43 = vmax.f32 %v1525_v59, 0.0  ;;  %v1134_v48 = vpop.permute.xlu0 %1133  ;;  %v1139_v9 = vpop.permute.xlu1 %1138 }
 0x188   : > { %v1819_v1 = vmax.f32 %v1527_v56, 0.0  ;;  %v1903_v40 = vmax.f32 %v1737_v42, 0.0 }
 0x189   : > { %v1820_v3 = vmax.f32 %v1529_v58, 0.0  ;;  %v1904_v45 = vmax.f32 %v1739_v44, 0.0 }
 0x18a   : > { %v1938_v54 = vpack.c.bf16 %v1819_v1, %v1817_v63  ;;  %v3735_v37 = vpack.c.bf16 %v1903_v40, %v1901_v61 }
 0x18b   : > { %v1939_v49 = vpack.c.bf16 %v1820_v3, %v1818_v43  ;;  %v1532_v39 = vpop.f32.mrb[20].mxu0  ;;  %v3737_v41 = vpack.c.bf16 %v1904_v45, %v1902_v46  ;;  %v1742_v52 = vpop.f32.mrb[20].mxu1 }
 0x18c   : > { %v1533_v5 = vadd.f32 %v1532_v39, %v3610_v6  ;;  %v1534_v50 = vpop.f32.mrb[21].mxu0  ;;  %v1743_v47 = vadd.f32 %v1742_v52, %v1134_v48  ;;  %v1744_v2 = vpop.f32.mrb[21].mxu1 }
 0x18d   : > { %v1535_v56 = vadd.f32 %v1534_v50, %v3610_v6  ;;  %v1536_v59 = vpop.f32.mrb[22].mxu0  ;;  %2033 = vmatprep.subr.bf16.mxu1 %v1939_v49  ;;  %v1745_v55 = vadd.f32 %v1744_v2, %v1134_v48  ;;  %v1746_v42 = vpop.f32.mrb[22].mxu1 }
 0x18e   : > { %v1537_v62 = vadd.f32 %v1536_v59, %v3614_v7  ;;  %v1538_v61 = vpop.f32.mrb[23].mxu0  ;;  %2034 = vmatpush1.bf16.msra.mxu1 %v1938_v54  ;;  %v1905_v58 = vmax.f32 %v1743_v47, 0.0  ;;  %v1747_v44 = vadd.f32 %v1746_v42, %v1139_v9  ;;  %v1748_v46 = vpop.f32.mrb[23].mxu1  ;;  %v1821_v43 = vmax.f32 %v1533_v5, 0.0 }
 0x18f   : > { %v1539_v63 = vadd.f32 %v1538_v61, %v3614_v7  ;;  %v1906_v1 = vmax.f32 %v1745_v55, 0.0  ;;  %v1749_v40 = vadd.f32 %v1748_v46, %v1139_v9  ;;  %v1822_v39 = vmax.f32 %v1535_v56, 0.0  ;;  %v1144_v49 = vpop.permute.xlu0 %1143  ;;  %v1149_v50 = vpop.permute.xlu1 %1148 }
 0x190   : > { %v1823_v3 = vmax.f32 %v1537_v62, 0.0  ;;  %v1907_v45 = vmax.f32 %v1747_v44, 0.0 }
 0x191   : > { %v1824_v6 = vmax.f32 %v1539_v63, 0.0  ;;  %v1908_v52 = vmax.f32 %v1749_v40, 0.0 }
 0x192   : > { %v1940_v48 = vpack.c.bf16 %v1823_v3, %v1821_v43  ;;  %v3743_v2 = vpack.c.bf16 %v1907_v45, %v1905_v58 }
 0x193   : > { %v1941_v59 = vpack.c.bf16 %v1824_v6, %v1822_v39  ;;  %v1542_v54 = vpop.f32.mrb[24].mxu0  ;;  %v3745_v47 = vpack.c.bf16 %v1908_v52, %v1906_v1  ;;  %v1752_v42 = vpop.f32.mrb[24].mxu1 }
 0x194   : > { %v1543_v7 = vadd.f32 %v1542_v54, %v3616_v8  ;;  %v1544_v55 = vpop.f32.mrb[25].mxu0  ;;  %v1753_v9 = vadd.f32 %v1752_v42, %v1144_v49  ;;  %v1754_v5 = vpop.f32.mrb[25].mxu1 }
 0x195   : > { %v1545_v62 = vadd.f32 %v1544_v55, %v3616_v8  ;;  %v1546_v56 = vpop.f32.mrb[26].mxu0  ;;  %2035 = vmatprep.subr.bf16.mxu1 %v1941_v59  ;;  %v1755_v61 = vadd.f32 %v1754_v5, %v1144_v49  ;;  %v1756_v44 = vpop.f32.mrb[26].mxu1 }
 0x196   : > { %v1547_v46 = vadd.f32 %v1546_v56, %v3621_v10  ;;  %v1548_v58 = vpop.f32.mrb[27].mxu0  ;;  %2036 = vmatpush1.bf16.msra.mxu1 %v1940_v48  ;;  %v1909_v63 = vmax.f32 %v1753_v9, 0.0  ;;  %v1757_v40 = vadd.f32 %v1756_v44, %v1149_v50  ;;  %v1758_v1 = vpop.f32.mrb[27].mxu1  ;;  %v1825_v39 = vmax.f32 %v1543_v7, 0.0 }
 0x197   : > { %v1549_v43 = vadd.f32 %v1548_v58, %v3621_v10  ;;  %v1910_v3 = vmax.f32 %v1755_v61, 0.0  ;;  %v1759_v45 = vadd.f32 %v1758_v1, %v1149_v50  ;;  %v1826_v54 = vmax.f32 %v1545_v62, 0.0  ;;  %v1154_v59 = vpop.permute.xlu0 %1153  ;;  %v1159_v49 = vpop.permute.xlu1 %1158 }
 0x198   : > { %v1827_v6 = vmax.f32 %v1547_v46, 0.0  ;;  %v1911_v52 = vmax.f32 %v1757_v40, 0.0 }
 0x199   : > { %v1828_v8 = vmax.f32 %v1549_v43, 0.0  ;;  %v1912_v42 = vmax.f32 %v1759_v45, 0.0 }
 0x19a   : > { %v1942_v55 = vpack.c.bf16 %v1827_v6, %v1825_v39  ;;  %v3751_v5 = vpack.c.bf16 %v1911_v52, %v1909_v63 }
 0x19b   : > { %v1943_v56 = vpack.c.bf16 %v1828_v8, %v1826_v54  ;;  %v3753_v48 = vpack.c.bf16 %v1912_v42, %v1910_v3  ;;  %v1552_v9 = vpop.f32.mrb[28].mxu0  ;;  %v1762_v44 = vpop.f32.mrb[28].mxu1 }
 0x19c   : > { %v1553_v10 = vadd.f32 %v1552_v9, %v3623_v11  ;;  %v1763_v61 = vadd.f32 %v1762_v44, %v1154_v59  ;;  %v1554_v50 = vpop.f32.mrb[29].mxu0  ;;  %v1764_v7 = vpop.f32.mrb[29].mxu1 }
 0x19d   : > { %v1555_v46 = vadd.f32 %v1554_v50, %v3623_v11  ;;  %v1765_v62 = vadd.f32 %v1764_v7, %v1154_v59  ;;  %v1556_v58 = vpop.f32.mrb[30].mxu0  ;;  %v1766_v40 = vpop.f32.mrb[30].mxu1  ;;  %2037 = vmatprep.subr.bf16.mxu1 %v1943_v56 }
 0x19e   : > { %v1913_v1 = vmax.f32 %v1763_v61, 0.0  ;;  %v1557_v63 = vadd.f32 %v1556_v58, %v3627_v12  ;;  %v1767_v43 = vadd.f32 %v1766_v40, %v1159_v49  ;;  %v1558_v45 = vpop.f32.mrb[31].mxu0  ;;  %v1768_v3 = vpop.f32.mrb[31].mxu1  ;;  %2038 = vmatpush1.bf16.msra.mxu1 %v1942_v55  ;;  %v1829_v54 = vmax.f32 %v1553_v10, 0.0 }
 0x19f   : > { %v1914_v39 = vmax.f32 %v1765_v62, 0.0  ;;  %v1559_v6 = vadd.f32 %v1558_v45, %v3627_v12  ;;  %v1769_v52 = vadd.f32 %v1768_v3, %v1159_v49  ;;  %v1830_v9 = vmax.f32 %v1555_v46, 0.0  ;;  %v1164_v44 = vpop.permute.xlu0 %1163  ;;  %v1169_v50 = vpop.permute.xlu1 %1168 }
 0x1a0   : > { %v1831_v8 = vmax.f32 %v1557_v63, 0.0  ;;  %v1915_v42 = vmax.f32 %v1767_v43, 0.0 }
 0x1a1   : > { %v1832_v11 = vmax.f32 %v1559_v6, 0.0  ;;  %v1916_v59 = vmax.f32 %v1769_v52, 0.0 }
 0x1a2   : > { %v1944_v56 = vpack.c.bf16 %v1831_v8, %v1829_v54  ;;  %v3759_v61 = vpack.c.bf16 %v1915_v42, %v1913_v1 }
 0x1a3   : > { %v1945_v7 = vpack.c.bf16 %v1832_v11, %v1830_v9  ;;  %v3761_v58 = vpack.c.bf16 %v1916_v59, %v1914_v39  ;;  %v1562_v40 = vpop.f32.mrb[32].mxu0  ;;  %v1772_v55 = vpop.f32.mrb[32].mxu1 }
 0x1a4   : > { %v1563_v62 = vadd.f32 %v1562_v40, %v3629_v13  ;;  %v1773_v12 = vadd.f32 %v1772_v55, %v1164_v44  ;;  %v1564_v49 = vpop.f32.mrb[33].mxu0  ;;  %v1774_v10 = vpop.f32.mrb[33].mxu1 }
 0x1a5   : > { %v1565_v63 = vadd.f32 %v1564_v49, %v3629_v13  ;;  %v1775_v46 = vadd.f32 %v1774_v10, %v1164_v44  ;;  %v1566_v43 = vpop.f32.mrb[34].mxu0  ;;  %v1776_v45 = vpop.f32.mrb[34].mxu1  ;;  %2039 = vmatprep.subr.bf16.mxu1 %v1945_v7 }
 0x1a6   : > { %v1917_v3 = vmax.f32 %v1773_v12, 0.0  ;;  %v1567_v1 = vadd.f32 %v1566_v43, %v3634_v15  ;;  %v1777_v6 = vadd.f32 %v1776_v45, %v1169_v50  ;;  %v1568_v52 = vpop.f32.mrb[35].mxu0  ;;  %v1778_v39 = vpop.f32.mrb[35].mxu1  ;;  %2040 = vmatpush1.bf16.msra.mxu1 %v1944_v56  ;;  %v1833_v9 = vmax.f32 %v1563_v62, 0.0 }
 0x1a7   : > { %v1918_v54 = vmax.f32 %v1775_v46, 0.0  ;;  %v1569_v8 = vadd.f32 %v1568_v52, %v3634_v15  ;;  %v1779_v42 = vadd.f32 %v1778_v39, %v1169_v50  ;;  %v1834_v40 = vmax.f32 %v1565_v63, 0.0  ;;  %v1174_v55 = vpop.permute.xlu0 %1173  ;;  %v1179_v49 = vpop.permute.xlu1 %1178 }
 0x1a8   : > { %v1835_v11 = vmax.f32 %v1567_v1, 0.0  ;;  %v1919_v59 = vmax.f32 %v1777_v6, 0.0 }
 0x1a9   : > { %v1836_v13 = vmax.f32 %v1569_v8, 0.0  ;;  %v1920_v44 = vmax.f32 %v1779_v42, 0.0 }
 0x1aa   : > { %v1946_v7 = vpack.c.bf16 %v1835_v11, %v1833_v9  ;;  %v3767_v12 = vpack.c.bf16 %v1919_v59, %v1917_v3 }
 0x1ab   : > { %v1947_v10 = vpack.c.bf16 %v1836_v13, %v1834_v40  ;;  %v3769_v43 = vpack.c.bf16 %v1920_v44, %v1918_v54  ;;  %v1572_v45 = vpop.f32.mrb[36].mxu0  ;;  %v1782_v56 = vpop.f32.mrb[36].mxu1 }
 0x1ac   : > { %v1573_v46 = vadd.f32 %v1572_v45, %v3636_v17  ;;  %v1783_v15 = vadd.f32 %v1782_v56, %v1174_v55  ;;  %v1574_v50 = vpop.f32.mrb[37].mxu0  ;;  %v1784_v62 = vpop.f32.mrb[37].mxu1 }
 0x1ad   : > { %v1575_v1 = vadd.f32 %v1574_v50, %v3636_v17  ;;  %v1785_v63 = vadd.f32 %v1784_v62, %v1174_v55  ;;  %v1576_v6 = vpop.f32.mrb[38].mxu0  ;;  %v1786_v52 = vpop.f32.mrb[38].mxu1  ;;  %2041 = vmatprep.subr.bf16.mxu1 %v1947_v10 }
 0x1ae   : > { %v1921_v39 = vmax.f32 %v1783_v15, 0.0  ;;  %v1577_v3 = vadd.f32 %v1576_v6, %v3639_v18  ;;  %v1787_v8 = vadd.f32 %v1786_v52, %v1179_v49  ;;  %v1578_v42 = vpop.f32.mrb[39].mxu0  ;;  %v1788_v54 = vpop.f32.mrb[39].mxu1  ;;  %2042 = vmatpush1.bf16.msra.mxu1 %v1946_v7  ;;  %v1837_v40 = vmax.f32 %v1573_v46, 0.0 }
 0x1af   : > { %v1922_v9 = vmax.f32 %v1785_v63, 0.0  ;;  %v1579_v11 = vadd.f32 %v1578_v42, %v3639_v18  ;;  %v1789_v59 = vadd.f32 %v1788_v54, %v1179_v49  ;;  %v1184_v45 = vpop.permute.xlu0 %1183  ;;  %v1838_v17 = vmax.f32 %v1575_v1, 0.0  ;;  %v1189_v50 = vpop.permute.xlu1 %1188 }
 0x1b0   : > { %v1839_v13 = vmax.f32 %v1577_v3, 0.0  ;;  %v1923_v44 = vmax.f32 %v1787_v8, 0.0 }
 0x1b1   : > { %v1840_v55 = vmax.f32 %v1579_v11, 0.0  ;;  %v1924_v56 = vmax.f32 %v1789_v59, 0.0 }
 0x1b2   : > { %v1948_v10 = vpack.c.bf16 %v1839_v13, %v1837_v40  ;;  %v3775_v15 = vpack.c.bf16 %v1923_v44, %v1921_v39 }
 0x1b3   : > { %v1949_v62 = vpack.c.bf16 %v1840_v55, %v1838_v17  ;;  %v3777_v6 = vpack.c.bf16 %v1924_v56, %v1922_v9  ;;  %v1582_v52 = vpop.f32.mrb[40].mxu0  ;;  %v1792_v7 = vpop.f32.mrb[40].mxu1 }
 0x1b4   : > { %v1583_v63 = vadd.f32 %v1582_v52, %v3641_v19  ;;  %v1793_v18 = vadd.f32 %v1792_v7, %v1184_v45  ;;  %v1584_v49 = vpop.f32.mrb[41].mxu0  ;;  %v1794_v46 = vpop.f32.mrb[41].mxu1 }
 0x1b5   : > { %v1585_v3 = vadd.f32 %v1584_v49, %v3641_v19  ;;  %v1795_v8 = vadd.f32 %v1794_v46, %v1184_v45  ;;  %v1586_v1 = vpop.f32.mrb[42].mxu0  ;;  %v1796_v42 = vpop.f32.mrb[42].mxu1  ;;  %2043 = vmatprep.subr.bf16.mxu1 %v1949_v62 }
 0x1b6   : > { %v1587_v54 = vadd.f32 %v1586_v1, %v3643_v20  ;;  %v1797_v39 = vadd.f32 %v1796_v42, %v1189_v50  ;;  %v1588_v11 = vpop.f32.mrb[43].mxu0  ;;  %v1798_v59 = vpop.f32.mrb[43].mxu1  ;;  %2044 = vmatpush1.bf16.msra.mxu1 %v1948_v10  ;;  %v1841_v13 = vmax.f32 %v1583_v63, 0.0  ;;  %v1925_v44 = vmax.f32 %v1793_v18, 0.0 }
 0x1b7   : > { %v1589_v9 = vadd.f32 %v1588_v11, %v3643_v20  ;;  %v1799_v40 = vadd.f32 %v1798_v59, %v1189_v50  ;;  %v1842_v56 = vmax.f32 %v1585_v3, 0.0  ;;  %v1926_v52 = vmax.f32 %v1795_v8, 0.0 }
 0x1b8   : > { %v1843_v17 = vmax.f32 %v1587_v54, 0.0  ;;  %v1927_v55 = vmax.f32 %v1797_v39, 0.0 }
 0x1b9   : > { %v1844_v19 = vmax.f32 %v1589_v9, 0.0  ;;  %v1928_v45 = vmax.f32 %v1799_v40, 0.0 }
 0x1ba   : > { %v1950_v7 = vpack.c.bf16 %v1843_v17, %v1841_v13  ;;  %v3783_v49 = vpack.c.bf16 %v1927_v55, %v1925_v44 }
 0x1bb   : > { %v1951_v62 = vpack.c.bf16 %v1844_v19, %v1842_v56  ;;  %v3785_v46 = vpack.c.bf16 %v1928_v45, %v1926_v52  ;;  %v1592_v1 = vpop.f32.mrb[44].mxu0 }
 0x1bc   : > { %v1593_v10 = vadd.f32 %v1592_v1, %v3645_v16  ;;  %v1594_v42 = vpop.f32.mrb[45].mxu0 }
 0x1bd   : > { %v1595_v20 = vadd.f32 %v1594_v42, %v3645_v16  ;;  %v1596_v50 = vpop.f32.mrb[46].mxu0  ;;  %2045 = vmatprep.subr.bf16.mxu1 %v1951_v62 }
 0x1be   : > { %v1597_v63 = vadd.f32 %v1596_v50, %v3647_v21  ;;  %v1598_v18 = vpop.f32.mrb[47].mxu0  ;;  %2046 = vmatpush1.bf16.msra.mxu1 %v1950_v7  ;;  %v1845_v8 = vmax.f32 %v1593_v10, 0.0 }
 0x1bf   : > { %v1599_v3 = vadd.f32 %v1598_v18, %v3647_v21  ;;  %v1846_v39 = vmax.f32 %v1595_v20, 0.0 }
 0x1c0   : > { %v1847_v54 = vmax.f32 %v1597_v63, 0.0 }
 0x1c1   : > { %v1848_v11 = vmax.f32 %v1599_v3, 0.0 }
 0x1c2   : > { %v1952_v59 = vpack.c.bf16 %v1847_v54, %v1845_v8 }
 0x1c3   : > { %v1953_v9 = vpack.c.bf16 %v1848_v11, %v1846_v39  ;;  %v1602_v40 = vpop.f32.mrb[48].mxu0 }
 0x1c4   : > { %v1603_v13 = vadd.f32 %v1602_v40, %v3649_v22  ;;  %v1604_v44 = vpop.f32.mrb[49].mxu0 }
 0x1c5   : > { %v1605_v16 = vadd.f32 %v1604_v44, %v3649_v22  ;;  %v1606_v17 = vpop.f32.mrb[50].mxu0  ;;  %2047 = vmatprep.subr.bf16.mxu1 %v1953_v9 }
 0x1c6   : > { %v1607_v55 = vadd.f32 %v1606_v17, %v3651_v23  ;;  %v1608_v56 = vpop.f32.mrb[51].mxu0  ;;  %2048 = vmatpush1.bf16.msra.mxu1 %v1952_v59  ;;  %v1849_v52 = vmax.f32 %v1603_v13, 0.0 }
 0x1c7   : > { %v1609_v21 = vadd.f32 %v1608_v56, %v3651_v23  ;;  %v1850_v45 = vmax.f32 %v1605_v16, 0.0 }
 0x1c8   : > { %v1851_v19 = vmax.f32 %v1607_v55, 0.0 }
 0x1c9   : > { %v1852_v7 = vmax.f32 %v1609_v21, 0.0 }
 0x1ca   : > { %v1954_v62 = vpack.c.bf16 %v1851_v19, %v1849_v52 }
 0x1cb   : > { %v1955_v1 = vpack.c.bf16 %v1852_v7, %v1850_v45  ;;  %v1612_v10 = vpop.f32.mrb[52].mxu0 }
 0x1cc   : > { %v1613_v42 = vadd.f32 %v1612_v10, %v3653_v24  ;;  %v1614_v20 = vpop.f32.mrb[53].mxu0 }
 0x1cd   : > { %v1615_v22 = vadd.f32 %v1614_v20, %v3653_v24  ;;  %v1616_v50 = vpop.f32.mrb[54].mxu0  ;;  %2049 = vmatprep.subr.bf16.mxu1 %v1955_v1 }
 0x1ce   : > { %v1617_v63 = vadd.f32 %v1616_v50, %v3655_v25  ;;  %v1618_v18 = vpop.f32.mrb[55].mxu0  ;;  %2050 = vmatpush1.bf16.msra.mxu1 %v1954_v62  ;;  %v1853_v3 = vmax.f32 %v1613_v42, 0.0 }
 0x1cf   : > { %v1619_v23 = vadd.f32 %v1618_v18, %v3655_v25  ;;  %v1854_v54 = vmax.f32 %v1615_v22, 0.0 }
 0x1d0   : > { %v1855_v8 = vmax.f32 %v1617_v63, 0.0 }
 0x1d1   : > { %v1856_v39 = vmax.f32 %v1619_v23, 0.0 }
 0x1d2   : > { %v1956_v11 = vpack.c.bf16 %v1855_v8, %v1853_v3 }
 0x1d3   : > { %v1957_v59 = vpack.c.bf16 %v1856_v39, %v1854_v54  ;;  %v1622_v9 = vpop.f32.mrb[56].mxu0 }
 0x1d4   : > { %v1623_v40 = vadd.f32 %v1622_v9, %v3657_v26  ;;  %v1624_v13 = vpop.f32.mrb[57].mxu0 }
 0x1d5   : > { %v1625_v24 = vadd.f32 %v1624_v13, %v3657_v26  ;;  %v1626_v44 = vpop.f32.mrb[58].mxu0  ;;  %2051 = vmatprep.subr.bf16.mxu1 %v1957_v59  ;;  %v3811_v59 = vrot.slane %v3692_v57, %v3697_v38 }
 0x1d6   : > { %v1627_v16 = vadd.f32 %v1626_v44, %v3659_v27  ;;  %v1628_v17 = vpop.f32.mrb[59].mxu0  ;;  %2052 = vmatpush1.bf16.msra.mxu1 %v1956_v11  ;;  %v1857_v55 = vmax.f32 %v1623_v40, 0.0  ;;  %v2020_v40 = vcombine.high %v3707_v14, %v3707_v14 }
 0x1d7   : > { %v1629_v25 = vadd.f32 %v1628_v17, %v3659_v27  ;;  %v1858_v21 = vmax.f32 %v1625_v24, 0.0 }
 0x1d8   : > { %v1859_v56 = vmax.f32 %v1627_v16, 0.0 }
 0x1d9   : > { %v1860_v52 = vmax.f32 %v1629_v25, 0.0 }
 0x1da   : > { %v1958_v19 = vpack.c.bf16 %v1859_v56, %v1857_v55 }
 0x1db   : > { %v1959_v45 = vpack.c.bf16 %v1860_v52, %v1858_v21  ;;  %v1632_v7 = vpop.f32.mrb[60].mxu0 }
 0x1dc   : > { %v1633_v62 = vadd.f32 %v1632_v7, %v3661_v28  ;;  %v1634_v1 = vpop.f32.mrb[61].mxu0 }
 0x1dd   : > { %v1635_v26 = vadd.f32 %v1634_v1, %v3661_v28  ;;  %v1636_v10 = vpop.f32.mrb[62].mxu0  ;;  %2053 = vmatprep.subr.bf16.mxu1 %v1959_v45 }
 0x1de   : > { %v1637_v42 = vadd.f32 %v1636_v10, %v3663_v29  ;;  %v1638_v20 = vpop.f32.mrb[63].mxu0  ;;  %2054 = vmatpush1.bf16.msra.mxu1 %v1958_v19  ;;  %v1861_v22 = vmax.f32 %v1633_v62, 0.0 }
 0x1df   : > { %v1639_v27 = vadd.f32 %v1638_v20, %v3663_v29  ;;  %v1862_v63 = vmax.f32 %v1635_v26, 0.0 }
 0x1e0   : > { %v1863_v50 = vmax.f32 %v1637_v42, 0.0 }
 0x1e1   : > { %v1864_v18 = vmax.f32 %v1639_v27, 0.0 }
 0x1e2   : > { %v1960_v23 = vpack.c.bf16 %v1863_v50, %v1861_v22 }
 0x1e3   : > { %v1961_v3 = vpack.c.bf16 %v1864_v18, %v1862_v63  ;;  %v1642_v8 = vpop.f32.mrb[64].mxu0 }
 0x1e4   : > { %v1643_v54 = vadd.f32 %v1642_v8, %v3665_v30  ;;  %v1644_v39 = vpop.f32.mrb[65].mxu0 }
 0x1e5   : > { %v1645_v28 = vadd.f32 %v1644_v39, %v3665_v30  ;;  %v1646_v11 = vpop.f32.mrb[66].mxu0  ;;  %2055 = vmatprep.subr.bf16.mxu1 %v1961_v3 }
 0x1e6   : > { %v1647_v29 = vadd.f32 %v1646_v11, %v3667_v31  ;;  %v1648_v9 = vpop.f32.mrb[67].mxu0  ;;  %2056 = vmatpush1.bf16.msra.mxu1 %v1960_v23  ;;  %v1865_v24 = vmax.f32 %v1643_v54, 0.0 }
 0x1e7   : > { %v1649_v13 = vadd.f32 %v1648_v9, %v3667_v31  ;;  %v1866_v16 = vmax.f32 %v1645_v28, 0.0 }
 0x1e8   : > { %v1867_v44 = vmax.f32 %v1647_v29, 0.0 }
 0x1e9   : > { %v1868_v17 = vmax.f32 %v1649_v13, 0.0  ;;  %2058 = vmatmul.mubr.bf16.vlgmr.msra.gmra.mrb[44].mxu1 %v3811_v59 }
 0x1ea   : > { %v1962_v30 = vpack.c.bf16 %v1867_v44, %v1865_v24  ;;  %2098 = vmatprep.mubr.bf16.mxu1 %v2020_v40  ;;  %v4018_v40 = vld [vmem:[#allocation14_spill] sm:$0xff] }
 0x1eb   : > { %v1963_v25 = vpack.c.bf16 %v1868_v17, %v1866_v16  ;;  %v1652_v57 = vpop.f32.mrb[68].mxu0 }
 0x1ec   : > { %v1653_v55 = vadd.f32 %v1652_v57, %v3669_v32  ;;  %v1654_v56 = vpop.f32.mrb[69].mxu0 }
 0x1ed   : > { %v1655_v21 = vadd.f32 %v1654_v56, %v3669_v32  ;;  %v1656_v52 = vpop.f32.mrb[70].mxu0  ;;  %2066 = vmatprep.subr.bf16.mxu1 %v1963_v25  ;;  %v4019_v56 = vld [vmem:[#allocation15_spill] sm:$0xff] }
 0x1ee   : > { %v1657_v14 = vadd.f32 %v1656_v52, %v3671_v33  ;;  %v1658_v31 = vpop.f32.mrb[71].mxu0  ;;  %2067 = vmatpush1.bf16.msra.mxu1 %v1962_v30  ;;  %v1869_v45 = vmax.f32 %v1653_v55, 0.0 }
 0x1ef   : > { %v1659_v19 = vadd.f32 %v1658_v31, %v3671_v33  ;;  %v1870_v62 = vmax.f32 %v1655_v21, 0.0  ;;  %v4020_v31 = vld [vmem:[#allocation16_spill] sm:$0xff] }
 0x1f0   : > { %v1871_v7 = vmax.f32 %v1657_v14, 0.0 }
 0x1f1   : > { %v1872_v1 = vmax.f32 %v1659_v19, 0.0 }
 0x1f2   : > { %v1964_v26 = vpack.c.bf16 %v1871_v7, %v1869_v45 }
 0x1f3   : > { %v1965_v10 = vpack.c.bf16 %v1872_v1, %v1870_v62  ;;  %v1662_v42 = vpop.f32.mrb[72].mxu0 }
 0x1f4   : > { %v1663_v20 = vadd.f32 %v1662_v42, %v3673_v34  ;;  %v1664_v27 = vpop.f32.mrb[73].mxu0 }
 0x1f5   : > { %v1665_v32 = vadd.f32 %v1664_v27, %v3673_v34  ;;  %v1666_v22 = vpop.f32.mrb[74].mxu0  ;;  %2068 = vmatprep.subr.bf16.mxu1 %v1965_v10  ;;  %v4021_v27 = vld [vmem:[#allocation18_spill] sm:$0xff] }
 0x1f6   : > { %v1667_v50 = vadd.f32 %v1666_v22, %v3675_v35  ;;  %v1668_v63 = vpop.f32.mrb[75].mxu0  ;;  %2069 = vmatpush1.bf16.msra.mxu1 %v1964_v26  ;;  %v1873_v18 = vmax.f32 %v1663_v20, 0.0  ;;  %v4023_v22 = vld [vmem:[#allocation19_spill] sm:$0xff] }
 0x1f7   : > { %v1669_v33 = vadd.f32 %v1668_v63, %v3675_v35  ;;  %v1874_v3 = vmax.f32 %v1665_v32, 0.0  ;;  %v4022_v32 = vld [vmem:[#allocation17_spill] sm:$0xff] }
 0x1f8   : > { %v1875_v23 = vmax.f32 %v1667_v50, 0.0 }
 0x1f9   : > { %v1876_v8 = vmax.f32 %v1669_v33, 0.0 }
 0x1fa   : > { %v1966_v54 = vpack.c.bf16 %v1875_v23, %v1873_v18 }
 0x1fb   : > { %v1967_v39 = vpack.c.bf16 %v1876_v8, %v1874_v3  ;;  %v1672_v28 = vpop.f32.mrb[76].mxu0 }
 0x1fc   : > { %v1673_v11 = vadd.f32 %v1672_v28, %v3677_v36  ;;  %v1674_v29 = vpop.f32.mrb[77].mxu0 }
 0x1fd   : > { %v1675_v34 = vadd.f32 %v1674_v29, %v3677_v36  ;;  %v1676_v9 = vpop.f32.mrb[78].mxu0  ;;  %2070 = vmatprep.subr.bf16.mxu1 %v1967_v39 }
 0x1fe   : > { %v1677_v13 = vadd.f32 %v1676_v9, %v4018_v40  ;;  %v1678_v24 = vpop.f32.mrb[79].mxu0  ;;  %2071 = vmatpush1.bf16.msra.mxu1 %v1966_v54  ;;  %v1877_v44 = vmax.f32 %v1673_v11, 0.0 }
 0x1ff   : > { %v1679_v35 = vadd.f32 %v1678_v24, %v4018_v40  ;;  %v1878_v17 = vmax.f32 %v1675_v34, 0.0 }
 0x200   : > { %v1879_v16 = vmax.f32 %v1677_v13, 0.0 }
 0x201   : > { %v1880_v30 = vmax.f32 %v1679_v35, 0.0 }
 0x202   : > { %v1968_v25 = vpack.c.bf16 %v1879_v16, %v1877_v44 }
 0x203   : > { %v1969_v57 = vpack.c.bf16 %v1880_v30, %v1878_v17  ;;  %v1682_v55 = vpop.f32.mrb[80].mxu0 }
 0x204   : > { %v1683_v21 = vadd.f32 %v1682_v55, %v4019_v56  ;;  %v1684_v52 = vpop.f32.mrb[81].mxu0 }
 0x205   : > { %v1685_v36 = vadd.f32 %v1684_v52, %v4019_v56  ;;  %v1686_v14 = vpop.f32.mrb[82].mxu0  ;;  %2072 = vmatprep.subr.bf16.mxu1 %v1969_v57 }
 0x206   : > { %v1687_v19 = vadd.f32 %v1686_v14, %v4020_v31  ;;  %v1688_v45 = vpop.f32.mrb[83].mxu0  ;;  %2073 = vmatpush1.bf16.msra.mxu1 %v1968_v25  ;;  %v1881_v62 = vmax.f32 %v1683_v21, 0.0 }
 0x207   : > { %v1689_v7 = vadd.f32 %v1688_v45, %v4020_v31  ;;  %v1882_v26 = vmax.f32 %v1685_v36, 0.0 }
 0x208   : > { %v1883_v1 = vmax.f32 %v1687_v19, 0.0 }
 0x209   : > { %v1884_v10 = vmax.f32 %v1689_v7, 0.0 }
 0x20a   : > { %v1970_v42 = vpack.c.bf16 %v1883_v1, %v1881_v62 }
 0x20b   : > { %v1971_v20 = vpack.c.bf16 %v1884_v10, %v1882_v26 }
 0x20d   : > { %2074 = vmatprep.subr.bf16.mxu1 %v1971_v20 }
 0x20e   : > { %2075 = vmatpush1.bf16.msra.mxu1 %v1970_v42 }
 0x20f   : > { %2076 = vmatprep.subr.bf16.mxu1 %v4021_v27 }
 0x212   : > { %2077 = vmatpush1.bf16.msra.mxu1 %v4022_v32 }
 0x213   : > { %2078 = vmatprep.subr.bf16.mxu1 %v3715_v53  ;;  %v2019_v53 = vcombine.high %v3811_v59, %v3811_v59 }
 0x216   : > { %2079 = vmatpush1.bf16.msra.mxu1 %v4023_v22 }
 0x217   : > { %2080 = vmatprep.subr.bf16.mxu1 %v3722_v0 }
 0x21a   : > { %2081 = vmatpush1.bf16.msra.mxu1 %v3719_v4  ;;  %v1995_v4 = vstv %s1994_s21 }
 0x21b   : > { %2082 = vmatprep.subr.bf16.mxu1 %v3729_v60 }
 0x21e   : > { %2083 = vmatpush1.bf16.msra.mxu1 %v3727_v51 }
 0x21f   : > { %2084 = vmatprep.subr.bf16.mxu1 %v3737_v41 }
 0x222   : > { %2085 = vmatpush1.bf16.msra.mxu1 %v3735_v37 }
 0x223   : > { %2086 = vmatprep.subr.bf16.mxu1 %v3745_v47 }
 0x226   : > { %2087 = vmatpush1.bf16.msra.mxu1 %v3743_v2 }
 0x227   : > { %2088 = vmatprep.subr.bf16.mxu1 %v3753_v48 }
 0x22a   : > { %2089 = vmatpush1.bf16.msra.mxu1 %v3751_v5 }
 0x22b   : > { %2090 = vmatprep.subr.bf16.mxu1 %v3761_v58  ;;  %v4024_v58 = vlaneseq }
 0x22d   : > { %vm3861_vm1 = vcmp.lt.s32.totalorder %v4024_v58, 256 }
 0x22e   : > { %2091 = vmatpush1.bf16.msra.mxu1 %v3759_v61 }
 0x22f   : > { %2092 = vmatprep.subr.bf16.mxu1 %v3769_v43 }
 0x232   : > { %2093 = vmatpush1.bf16.msra.mxu1 %v3767_v12 }
 0x233   : > { %2094 = vmatprep.subr.bf16.mxu1 %v3777_v6 }
 0x236   : > { %2095 = vmatpush1.bf16.msra.mxu1 %v3775_v15 }
 0x237   : > { %2096 = vmatprep.subr.bf16.mxu1 %v3785_v46 }
 0x23a   : > { %2097 = vmatpush1.bf16.msra.mxu1 %v3783_v49 }
 0x23d   : > { %2099 = vmatmul.mubr.bf16.vlgmr.msra.gmra.mrb[44].mxu1 %v2019_v53 }
 0x310   : > { %v2100_v0 = vpop.f32.mrb[44].mxu1 }
 0x311   : > { %v2530_v51 = vadd.f32 %v2100_v0, %v1995_v4  ;;  %v2102_v60 = vpop.f32.mrb[45].mxu1 }
 0x312   : > { %v2531_v37 = vadd.f32 %v2102_v60, %v1995_v4  ;;  %v2104_v41 = vpop.f32.mrb[46].mxu1 }
 0x313   : > { %v2508_v2 = vmul.f32 -1.442695, %v2530_v51  ;;  %v2105_v47 = vpop.f32.mrb[47].mxu1 }
 0x314   : > { %v2109_v5 = vcombine.low %v2530_v51, %v2531_v37  ;;  %v2509_v48 = vmul.f32 -1.442695, %v2531_v37 }
 0x315   : > { %2779 = vpow2.f32 %v2508_v2 }
 0x316   : > { %v2116_v61 = vrot.slane %v2109_v5, %v3697_v38  ;;  %2781 = vpow2.f32 %v2509_v48 }
 0x318   : > { %v2123_v43 = vrot.slane %v2116_v61, %v3697_v38 }
 0x31a   : > { %2129 = vst.msk [vmem:[%s3866_s10] sm:$0x3] %vm3861_vm1, %v2123_v43 }
 0x31f   : > { %v2780_v15 = vpop.eup %2779 }
 0x320   : > { %v2782_v6 = vpop.eup %2781  ;;  %v2136_v49 = vadd.f32 1.0, %v2780_v15 }
 0x321   : > { %v2137_v46 = vadd.f32 1.0, %v2782_v6 }
 0x322   : > { %2783 = vrcp.f32 %v2136_v49 }
 0x323   : > { %2785 = vrcp.f32 %v2137_v46 }
 0x32c   : > { %v2784_v59 = vpop.eup %2783 }
 0x32d   : > { %v2786_v50 = vpop.eup %2785 }
 0x32e   : > { %v2144_v63 = vcombine.low %v2784_v59, %v2786_v50  ;;  %2173 = sbr.rel (!%p3115_p8) target bundleno = 849 (0x351), region = 110 }
 0x330   : > { %v2151_v33 = vrot.slane %v2144_v63, %v3697_v38 }
 0x332   : > { %v2158_v18 = vrot.slane %v2151_v33, %v3697_v38 }
 0x334   : > { %2160 = vst.msk [vmem:[%s3873_s14] sm:$0x3] %vm3861_vm1, %v2158_v18 }
 0x335   : > { %s4047_s8 = smov (!%p2176_p1, %s2175_s8), 2 }
 0x336   : > { %s3883_s20 = sshll.u32 %s4047_s8, 4 }
 0x337   : > { %s2180_s7 = ssub.s32 32, %s3883_s20 }
 0x338   : > { %2181 = vsyncadd %s2162_s15, %s2180_s7  ;;  %s2537_s28 = smul.u32 3, %s2965_s27  ;;  %p2514_p2 = scmp.ne.s32.totalorder %s3883_s20, 0 }
 0x339   : > { %s2188_s29 = sshll.u32 %s3866_s10, 4  ;;  %s3015_s8 = smov [#allocation4]   ;;  %s3891_s29 = int_to_ptr.vmem [resolvable:$true] %s2188_s29 }
 0x33a   : > { %s2184_s18 = sadd.s32 %s2537_s28, %s2512_s22  ;;  %s2787_s19 = scalar_lea.vmem %s3891_s29, %s3883_s20 }
 0x33b   : > { %s2515_s9 = sshll.u32 %s2184_s18, 4  ;;  %p2788_p3 = scmp.ne.s32.totalorder %s3891_s29, %s2787_s19 }
 0x33c   : > { %s2186_s21 = scalar_lea.hbm %s3987_s5, %s2515_s9  ;;  %s2791_s7 = sshll.u32 %s3015_s8, 4  ;;  %s2792_s7 = int_to_ptr.vmem [resolvable:$false] %s2791_s7 }
 0x33d   : > { %p2789_p4 = pnand %p2788_p3, %p2514_p2  ;;  %s2793_s10 = scalar_lea.vmem %s2792_s7, 64 }
 0x33e   : > { %p2794_p6 = scmp.lt.s32.totalorder %s3891_s29, %s2792_s7  ;;  %p2795_p7 = scmp.lt.s32.totalorder %s2793_s10, %s2787_s19 }
 0x33f   : > { %p2790_p5 = pneg %p2789_p4 }
 0x340   : > { %p2796_p10 = por %p2795_p7, %p2794_p6 }
 0x342   : > { %p2797_p11 = pnand %p2796_p10, %p2790_p5 }
 0x344   : > { %2800 = shalt.err (!%p2797_p11)
}
 0x345   : > { %s2801_s22 = scalar_lea.hbm %s2186_s21, %s3883_s20  ;;  %s2805_s9 = scalar_lea.hbm %s3987_s5, 96 }
 0x346   : > { %p2802_p12 = scmp.ne.s32.totalorder %s2186_s21, %s2801_s22  ;;  %p2806_p1 = scmp.lt.u32.totalorder %s2186_s21, %s3987_s5 }
 0x347   : > { %p2807_p3 = scmp.lt.u32.totalorder %s2805_s9, %s2801_s22  ;;  %p2809_p6 = scmp.lt.u32.totalorder %s2801_s22, %s2186_s21 }
 0x348   : > { %p2803_p13 = pnand %p2802_p12, %p2514_p2 }
 0x349   : > { %p2808_p4 = por %p2807_p3, %p2806_p1 }
 0x34a   : > { %p2804_p0 = pneg %p2803_p13 }
 0x34b   : > { %p2810_p5 = por %p2809_p6, %p2808_p4 }
 0x34d   : > { %p2811_p7 = pnand %p2810_p5, %p2804_p0 }
 0x34f   : > { %2814 = shalt.err (!%p2811_p7)
}
 0x350   : > { %2191 = dma.vmem_to_hbm [thread:$0]  (%p2514_p2), %s3891_s29, %s3883_s20, %s2186_s21, %s2162_s15  }
 0x351 PF: > { %2194 = sbr.rel (!%p3115_p8) target bundleno = 884 (0x374), region = 114  ;;  %s2516_s19 = sshll.u32 (%p3115_p8), %s2961_s26, 1 }
 0x352   : > { %s2196_s8 = ssub.s32 (%p3115_p8), 3, %s2516_s19 }
 0x353   : > { %p2197_p10 = scmp.lt.s32.totalorder (%p3115_p8), %s2196_s8, 2 }
 0x358   : > { %s4049_s8 = smov (!%p2197_p10, %s2196_s8), 2 }
 0x359   : > { %s3920_s7 = sshll.u32 %s4049_s8, 4 }
 0x35a   : > { %s2201_s10 = ssub.s32 32, %s3920_s7 }
 0x35b   : > { %2202 = vsyncadd %s2167_s0, %s2201_s10  ;;  %s2538_s15 = smul.u32 3, %s2965_s27  ;;  %p2518_p2 = scmp.ne.s32.totalorder %s3920_s7, 0 }
 0x35c   : > { %s2209_s12 = sshll.u32 %s3873_s14, 4  ;;  %s3016_s18 = smov [#allocation6]   ;;  %s3928_s12 = int_to_ptr.vmem [resolvable:$true] %s2209_s12 }
 0x35d   : > { %s2205_s20 = sadd.s32 %s2538_s15, %s2516_s19  ;;  %s2815_s28 = scalar_lea.vmem %s3928_s12, %s3920_s7 }
 0x35e   : > { %s2519_s26 = sshll.u32 %s2205_s20, 4  ;;  %p2816_p8 = scmp.ne.s32.totalorder %s3928_s12, %s2815_s28 }
 0x35f   : > { %s2207_s22 = scalar_lea.hbm %s3988_s6, %s2519_s26  ;;  %s2819_s27 = sshll.u32 %s3016_s18, 4  ;;  %s2820_s27 = int_to_ptr.vmem [resolvable:$false] %s2819_s27 }
 0x360   : > { %p2817_p11 = pnand %p2816_p8, %p2518_p2  ;;  %s2821_s14 = scalar_lea.vmem %s2820_s27, 64 }
 0x361   : > { %p2822_p13 = scmp.lt.s32.totalorder %s3928_s12, %s2820_s27  ;;  %p2823_p0 = scmp.lt.s32.totalorder %s2821_s14, %s2815_s28 }
 0x362   : > { %p2818_p12 = pneg %p2817_p11 }
 0x363   : > { %p2824_p1 = por %p2823_p0, %p2822_p13 }
 0x365   : > { %p2825_p3 = pnand %p2824_p1, %p2818_p12 }
 0x367   : > { %2828 = shalt.err (!%p2825_p3)
}
 0x368   : > { %s2829_s9 = scalar_lea.hbm %s2207_s22, %s3920_s7  ;;  %s2833_s19 = scalar_lea.hbm %s3988_s6, 96 }
 0x369   : > { %p2830_p4 = scmp.ne.s32.totalorder %s2207_s22, %s2829_s9  ;;  %p2834_p7 = scmp.lt.u32.totalorder %s2207_s22, %s3988_s6 }
 0x36a   : > { %p2835_p10 = scmp.lt.u32.totalorder %s2833_s19, %s2829_s9  ;;  %p2837_p11 = scmp.lt.u32.totalorder %s2829_s9, %s2207_s22 }
 0x36b   : > { %p2831_p6 = pnand %p2830_p4, %p2518_p2 }
 0x36c   : > { %p2836_p8 = por %p2835_p10, %p2834_p7 }
 0x36d   : > { %p2832_p5 = pneg %p2831_p6 }
 0x36e   : > { %p2838_p12 = por %p2837_p11, %p2836_p8 }
 0x370   : > { %p2839_p13 = pnand %p2838_p12, %p2832_p5 }
 0x372   : > { %2842 = shalt.err (!%p2839_p13)
}
 0x373   : > { %2212 = dma.vmem_to_hbm [thread:$0]  (%p2518_p2), %s3928_s12, %s3920_s7, %s2207_s22, %s2167_s0  }
 0x374 PF: > { %p2548_p0 = scmp.ge.s32.totalorder %s2977_s30, 2  ;;  %s2221_s15 = sand.u32 1, %s2949_s23  }
 0x375   : > { %s2222_s20 = scalar_lea.sflag [#allocation5], %s2221_s15 }
 0x376   : > { %p2542_p1 = pnand %p2548_p0, %p3119_p9 }
 0x378   : > { %2940 = dma.done.wait (!%p2542_p1), %s2222_s20, 32  }
 0x379   : > { %2942 = vsyncadd (!%p2542_p1), %s2222_s20, 4294967264  ;;  %s2231_s26 = scalar_lea.sflag [#allocation7], %s2221_s15 }
 0x37a   : > { %2944 = dma.done.wait (!%p2542_p1), %s2231_s26, 32  }
 0x37b   : > { %2946 = vsyncadd (!%p2542_p1), %s2231_s26, 4294967264  ;;  %s24_s30 = sadd.s32 1, %s2977_s30   ;;  %s4027_s26 = sld [smem:[#allocation10_spill]] }
 0x37c   : > { %p21_p3 = scmp.ge.s32.totalorder %s24_s30, 6   ;;  %s4028_s27 = sld [smem:[#allocation11_spill]] }
 0x37d   : > { %s4029_s28 = sld [smem:[#allocation12_spill]]  ;;  %s4030_s29 = sld [smem:[#allocation13_spill]] }
 0x37e   : > { %s4031_s23 = smov %s2953_s24  ;;  %s4032_s24 = smov %s2957_s25 }
 0x37f   : > { %s4033_s25 = smov %s3127_s17  ;;  %23 = sbr.rel (!%p21_p3) target bundleno = 10 (0xa), region = 225 }
 0x386   :  { %2236 = vsyncpa [#allocation5], 1 }
 0x387   :  { %2238 = vsyncpa [#allocation5 + $0x1], 1 }
 0x388   :  { %2239 = vsyncpa [#allocation7], 1 }
 0x389   :  { %2241 = vsyncpa [#allocation7 + $0x1], 1 }

</bundles_post_ra>
